<compile_context>
chip_gen: v7x
topology: tpu7x:2x2x1
jax: 0.10.0
libtpu: 0.0.40
codegen_flags: <defaults>
</compile_context>

<pallas_src>
import jax
import jax.numpy as jnp
from jax import lax
from jax.experimental import pallas as pl
from jax.experimental.pallas import tpu as pltpu

_LANES = 128
_PLANES_PER_STEP_CAP = 8   # planes handled per grid step (bounds VMEM / vregs)


def _make_msdc_kernel(kernel_sizes, W, R, HB, P):
    """Fused multi-branch depthwise conv + (folded) BN + ReLU kernel body."""
    nb = len(kernel_sizes)
    maxpad = max(k // 2 for k in kernel_sizes)
    RW = R * W          # lanes per packed row (== 128 here)
    G = P * HB          # packed rows per grid step (plane-major, then row-block)

    def kernel(*refs):
        x_ref = refs[0]                         # (1, G, RW)
        wb_refs = refs[1:1 + nb]                # per branch: (1, G, k*k + 1)
        out_refs = refs[1 + nb:1 + 2 * nb]      # per branch: (1, G, RW)

        f32 = jnp.float32
        x_mid = x_ref[0]                        # (G, RW) -- fully lane/sublane dense

        # Hoisted iotas / masks.
        row = lax.broadcasted_iota(jnp.int32, (G, 1), 0)
        lane = lax.broadcasted_iota(jnp.int32, (1, RW), 1)
        lane_w = lane % W                       # image column within each packed row

        # Neighbouring packed rows of the SAME plane; rows at plane boundaries
        # (== image top/bottom) are zeroed -> vertical zero padding.  The roll
        # wraparound rows are exactly those masked rows, so it is harmless.
        if HB > 1:
            not_last = (row % HB != HB - 1).astype(f32)     # (G, 1)
            not_first = (row % HB != 0).astype(f32)
            x_hi = pltpu.roll(x_mid, shift=(-1) % G, axis=0) * not_last   # next row blk
            x_lo = pltpu.roll(x_mid, shift=1, axis=0) * not_first         # prev row blk
        else:
            x_hi = jnp.zeros_like(x_mid)
            x_lo = jnp.zeros_like(x_mid)

        accs = [jnp.zeros((G, RW), f32) for _ in range(nb)]

        # Tap-major: build each shifted block once, FMA into every covering branch.
        for dh in range(-maxpad, maxpad + 1):
            sh0 = dh * W
            if dh == 0:
                rowblk = x_mid
            else:
                nbr = x_hi if dh > 0 else x_lo
                r_mid = pltpu.roll(x_mid, shift=(-sh0) % RW, axis=1)
                r_nb = pltpu.roll(nbr, shift=(-sh0) % RW, axis=1)
                if dh > 0:
                    rowblk = jnp.where(lane < RW - sh0, r_mid, r_nb)
                else:
                    rowblk = jnp.where(lane >= -sh0, r_mid, r_nb)
            for dw in range(-maxpad, maxpad + 1):
                hit = [b for b, k in enumerate(kernel_sizes)
                       if abs(dh) <= k // 2 and abs(dw) <= k // 2]
                if not hit:
                    continue
                if dw == 0:
                    val = rowblk
                else:
                    shifted = pltpu.roll(rowblk, shift=(-dw) % RW, axis=1)
                    valid = (lane_w + dw >= 0) & (lane_w + dw < W)
                    val = jnp.where(valid, shifted, 0.0)    # horizontal zero padding
                for b in hit:
                    k = kernel_sizes[b]
                    pad = k // 2
                    t = (dh + pad) * k + (dw + pad)
                    w = wb_refs[b][0, :, t:t + 1]           # (G, 1) folded tap
                    accs[b] = accs[b] + val * w

        # Epilogue: folded BN bias + ReLU, 128-lane-dense stores.
        for b in range(nb):
            kk = kernel_sizes[b] * kernel_sizes[b]
            bias = wb_refs[b][0, :, kk:kk + 1]              # (G, 1)
            y = jnp.maximum(accs[b] + bias, 0.0)
            out_refs[b][0] = y.astype(out_refs[b].dtype)

    return kernel


def msdc_fused(x_nchw, branches):
    """branches: [(k, w_flat (C, k*k) f32 BN-folded, bias (C,) f32), ...]."""
    N, C, H, W = x_nchw.shape
    assert _LANES % W == 0, "W must divide 128"          # TODO(synk): tile W otherwise
    R = _LANES // W
    assert H % R == 0, "H must be a multiple of 128//W"  # TODO(synk): pad/tile H otherwise
    HB = H // R
    RW = R * W
    kernel_sizes = tuple(k for k, _, _ in branches)
    maxpad = max(k // 2 for k in kernel_sizes)
    assert maxpad <= R, "kernel taller than one packed row block"
    nb = len(branches)

    NP = N * C
    # Grid policy: >=2 parallel steps when possible (feeds both v7x TCs); cap
    # planes/step to bound VMEM; single-TC v5e/v6e just pay one extra tiny step.
    NG = max(pl.cdiv(NP, _PLANES_PER_STEP_CAP), 2 if NP >= 2 else 1)
    NG = min(NG, NP)
    P = pl.cdiv(NP, NG)
    NPp = NG * P
    G = P * HB

    # Metadata-only reshape of x into the packed layout (pad planes only if needed).
    xp = x_nchw.reshape(NP, H * W)
    if NPp != NP:
        xp = jnp.concatenate([xp, jnp.zeros((NPp - NP, H * W), xp.dtype)], axis=0)
    xg = xp.reshape(NG, G, RW)

    in_specs = [pl.BlockSpec((1, G, RW), lambda g: (g, 0, 0))]
    inputs = [xg]
    for k, w_flat, bias in branches:
        kk1 = k * k + 1
        wb = jnp.concatenate([w_flat, bias[:, None]], axis=1)     # (C, k*k+1)
        wb = jnp.tile(wb, (N, 1))                                 # (NP, k*k+1) plane-major
        if NPp != NP:
            wb = jnp.concatenate([wb, jnp.zeros((NPp - NP, kk1), wb.dtype)], axis=0)
        # Expand per packed row (HB rows per plane). TODO(synk): for very large
        # H keep per-plane blocks and broadcast in-kernel instead.
        wb = jnp.repeat(wb, HB, axis=0).reshape(NG, G, kk1)
        in_specs.append(pl.BlockSpec((1, G, kk1), lambda g: (g, 0, 0)))
        inputs.append(wb)

    out_shape = tuple(jax.ShapeDtypeStruct((NG, G, RW), jnp.float32) for _ in range(nb))
    out_specs = tuple(pl.BlockSpec((1, G, RW), lambda g: (g, 0, 0)) for _ in range(nb))

    outs = pl.pallas_call(
        _make_msdc_kernel(kernel_sizes, W, R, HB, P),
        out_shape=out_shape,
        grid=(NG,),
        in_specs=in_specs,
        out_specs=out_specs,
        compiler_params=pltpu.CompilerParams(dimension_semantics=("parallel",)),
    )(*inputs)

    # Metadata-only reshape back to NCHW (slice only if planes were padded).
    results = []
    for o in outs:
        o = o.reshape(NPp, H, W)
        if NPp != NP:
            o = o[:NP]
        results.append(o.reshape(N, C, H, W))
    return results


class MSDCPallas:
    """Pallas port of MSDC (dw_parallel=True path), eval-mode BatchNorm."""

    def __init__(self, in_channels, kernel_sizes, stride, activation='relu6',
                 dw_parallel=True, key=jax.random.PRNGKey(0)):
        assert stride == 1, "kernel implemented for stride=1"
        assert dw_parallel, "dw_parallel=False path needs AdaptiveRotatedConv2d"
        self.in_channels = in_channels
        self.kernel_sizes = tuple(kernel_sizes)
        assert all(k % 2 == 1 for k in self.kernel_sizes)
        self.stride = stride
        eps = 1e-5
        self.branches_raw = []   # (k, conv weight (C,1,k,k), bn scale, bn bias)
        self.branches = []       # (k, BN-folded taps (C,k*k), folded bias (C,))
        for i, k in enumerate(self.kernel_sizes):
            kw, kg, kb, km, kv = jax.random.split(jax.random.fold_in(key, i), 5)
            w = 0.1 * jax.random.normal(kw, (in_channels, 1, k, k), jnp.float32)
            gamma = 1.0 + 0.1 * jax.random.normal(kg, (in_channels,), jnp.float32)
            beta = 0.1 * jax.random.normal(kb, (in_channels,), jnp.float32)
            r_mean = 0.1 * jax.random.normal(km, (in_channels,), jnp.float32)
            r_var = jnp.abs(jax.random.normal(kv, (in_channels,), jnp.float32)) + 0.5
            scale = gamma / jnp.sqrt(r_var + eps)
            bias = beta - r_mean * scale
            self.branches_raw.append((k, w, scale, bias))
            w_flat = (w[:, 0] * scale[:, None, None]).reshape(in_channels, k * k)
            self.branches.append((k, w_flat, bias))

    def __call__(self, x_nchw):
        return list(msdc_fused(x_nchw, self.branches))

    def reference(self, x_nchw):
        """Pure-JAX reference (lax conv) for correctness checking."""
        outs = []
        for k, w, scale, bias in self.branches_raw:
            pad = k // 2
            y = lax.conv_general_dilated(
                x_nchw, w, window_strides=(self.stride, self.stride),
                padding=((pad, pad), (pad, pad)),
                dimension_numbers=('NCHW', 'OIHW', 'NCHW'),
                feature_group_count=self.in_channels)
            y = y * scale[None, :, None, None] + bias[None, :, None, None]
            outs.append(jnp.maximum(y, 0.0))
        return outs


if __name__ == "__main__":
    key = jax.random.PRNGKey(0)
    kx, kp = jax.random.split(key)

    N, C, H, W = 2, 4, 16, 16          # small NCHW input, like PyTorch
    x = jax.random.normal(kx, (N, C, H, W), jnp.float32)

    msdc = MSDCPallas(in_channels=C, kernel_sizes=(1, 3, 5), stride=1,
                      dw_parallel=True, key=kp)

    outs = msdc(x)
    for o in outs:
        jax.block_until_ready(o)

    refs = msdc.reference(x)
    for o, r in zip(outs, refs):
        assert o.shape == (N, C, H, W)
        assert jnp.allclose(o, r, atol=1e-5, rtol=1e-5), "mismatch vs reference"

    print("KERNEL_OK")
</pallas_src>

<mosaic_0001>
module attributes {stable_mosaic.version = 11 : i64} {
  func.func @kernel(%arg0: i32, %arg1: memref<1x8x128xf32, #tpu.memory_space<vmem>>, %arg2: memref<1x8x2xf32, #tpu.memory_space<vmem>>, %arg3: memref<1x8x10xf32, #tpu.memory_space<vmem>>, %arg4: memref<1x8x26xf32, #tpu.memory_space<vmem>>, %arg5: memref<1x8x128xf32, #tpu.memory_space<vmem>>, %arg6: memref<1x8x128xf32, #tpu.memory_space<vmem>>, %arg7: memref<1x8x128xf32, #tpu.memory_space<vmem>>) attributes {dimension_semantics = [#tpu.dimension_semantics<parallel>], iteration_bounds = array<i64: 2>, scalar_prefetch = 0 : i64, scratch_operands = 0 : i64, tpu.core_type = #tpu.core_type<tc>, window_params = [{transform_indices = @transform_0, window_bounds = array<i64: 1, 8, 128>}, {transform_indices = @transform_1, window_bounds = array<i64: 1, 8, 2>}, {transform_indices = @transform_2, window_bounds = array<i64: 1, 8, 10>}, {transform_indices = @transform_3, window_bounds = array<i64: 1, 8, 26>}, {transform_indices = @transform_4, window_bounds = array<i64: 1, 8, 128>}, {transform_indices = @transform_5, window_bounds = array<i64: 1, 8, 128>}, {transform_indices = @transform_6, window_bounds = array<i64: 1, 8, 128>}]} {
    %c0 = arith.constant 0 : index
    %c0_0 = arith.constant 0 : index
    %c0_1 = arith.constant 0 : index
    %0 = vector.load %arg1[%c0, %c0_0, %c0_1] : memref<1x8x128xf32, #tpu.memory_space<vmem>>, vector<1x8x128xf32>
    %1 = vector.shape_cast %0 : vector<1x8x128xf32> to vector<8x128xf32>
    %2 = tpu.iota {dimensions = array<i32: 0>} : vector<8x1xi32>
    %3 = tpu.iota {dimensions = array<i32: 1>} : vector<1x128xi32>
    %c16_i32 = arith.constant 16 : i32
    %c0_i32 = arith.constant 0 : i32
    %4 = arith.cmpi eq, %c16_i32, %c0_i32 : i32
    %c1_i32 = arith.constant 1 : i32
    %5 = arith.select %4, %c1_i32, %c16_i32 : i32
    %6 = vector.broadcast %5 : i32 to vector<1x128xi32>
    %7 = arith.remsi %3, %6 : vector<1x128xi32>
    %c0_i32_2 = arith.constant 0 : i32
    %8 = vector.broadcast %c0_i32_2 : i32 to vector<1x128xi32>
    %9 = arith.cmpi ne, %7, %8 : vector<1x128xi32>
    %c0_i32_3 = arith.constant 0 : i32
    %10 = vector.broadcast %c0_i32_3 : i32 to vector<1x128xi32>
    %11 = arith.cmpi slt, %7, %10 : vector<1x128xi32>
    %c0_i32_4 = arith.constant 0 : i32
    %12 = arith.cmpi slt, %5, %c0_i32_4 : i32
    %13 = vector.broadcast %12 : i1 to vector<1x128xi1>
    %14 = vector.broadcast %13 : vector<1x128xi1> to vector<1x128xi1>
    %15 = arith.xori %11, %14 : vector<1x128xi1>
    %16 = arith.andi %15, %9 : vector<1x128xi1>
    %17 = vector.broadcast %5 : i32 to vector<1x128xi32>
    %18 = arith.addi %7, %17 : vector<1x128xi32>
    %19 = arith.select %16, %18, %7 : vector<1x128xi1>, vector<1x128xi32>
    %c2_i32 = arith.constant 2 : i32
    %c0_i32_5 = arith.constant 0 : i32
    %20 = arith.cmpi eq, %c2_i32, %c0_i32_5 : i32
    %c1_i32_6 = arith.constant 1 : i32
    %21 = arith.select %20, %c1_i32_6, %c2_i32 : i32
    %22 = vector.broadcast %21 : i32 to vector<8x1xi32>
    %23 = arith.remsi %2, %22 : vector<8x1xi32>
    %c0_i32_7 = arith.constant 0 : i32
    %24 = vector.broadcast %c0_i32_7 : i32 to vector<8x1xi32>
    %25 = arith.cmpi ne, %23, %24 : vector<8x1xi32>
    %c0_i32_8 = arith.constant 0 : i32
    %26 = vector.broadcast %c0_i32_8 : i32 to vector<8x1xi32>
    %27 = arith.cmpi slt, %23, %26 : vector<8x1xi32>
    %c0_i32_9 = arith.constant 0 : i32
    %28 = arith.cmpi slt, %21, %c0_i32_9 : i32
    %29 = vector.broadcast %28 : i1 to vector<8x1xi1>
    %30 = vector.broadcast %29 : vector<8x1xi1> to vector<8x1xi1>
    %31 = arith.xori %27, %30 : vector<8x1xi1>
    %32 = arith.andi %31, %25 : vector<8x1xi1>
    %33 = vector.broadcast %21 : i32 to vector<8x1xi32>
    %34 = arith.addi %23, %33 : vector<8x1xi32>
    %35 = arith.select %32, %34, %23 : vector<8x1xi1>, vector<8x1xi32>
    %c1_i32_10 = arith.constant 1 : i32
    %36 = vector.broadcast %c1_i32_10 : i32 to vector<8x1xi32>
    %37 = arith.cmpi ne, %35, %36 : vector<8x1xi32>
    %38 = arith.extui %37 : vector<8x1xi1> to vector<8x1xi32>
    %39 = arith.sitofp %38 : vector<8x1xi32> to vector<8x1xf32>
    %c2_i32_11 = arith.constant 2 : i32
    %c0_i32_12 = arith.constant 0 : i32
    %40 = arith.cmpi eq, %c2_i32_11, %c0_i32_12 : i32
    %c1_i32_13 = arith.constant 1 : i32
    %41 = arith.select %40, %c1_i32_13, %c2_i32_11 : i32
    %42 = vector.broadcast %41 : i32 to vector<8x1xi32>
    %43 = arith.remsi %2, %42 : vector<8x1xi32>
    %c0_i32_14 = arith.constant 0 : i32
    %44 = vector.broadcast %c0_i32_14 : i32 to vector<8x1xi32>
    %45 = arith.cmpi ne, %43, %44 : vector<8x1xi32>
    %c0_i32_15 = arith.constant 0 : i32
    %46 = vector.broadcast %c0_i32_15 : i32 to vector<8x1xi32>
    %47 = arith.cmpi slt, %43, %46 : vector<8x1xi32>
    %c0_i32_16 = arith.constant 0 : i32
    %48 = arith.cmpi slt, %41, %c0_i32_16 : i32
    %49 = vector.broadcast %48 : i1 to vector<8x1xi1>
    %50 = vector.broadcast %49 : vector<8x1xi1> to vector<8x1xi1>
    %51 = arith.xori %47, %50 : vector<8x1xi1>
    %52 = arith.andi %51, %45 : vector<8x1xi1>
    %53 = vector.broadcast %41 : i32 to vector<8x1xi32>
    %54 = arith.addi %43, %53 : vector<8x1xi32>
    %55 = arith.select %52, %54, %43 : vector<8x1xi1>, vector<8x1xi32>
    %c0_i32_17 = arith.constant 0 : i32
    %56 = vector.broadcast %c0_i32_17 : i32 to vector<8x1xi32>
    %57 = arith.cmpi ne, %55, %56 : vector<8x1xi32>
    %58 = arith.extui %57 : vector<8x1xi1> to vector<8x1xi32>
    %59 = arith.sitofp %58 : vector<8x1xi32> to vector<8x1xf32>
    %c7_i32 = arith.constant 7 : i32
    %60 = tpu.dynamic_rotate %1 by %c7_i32 dim 0 : vector<8x128xf32>, i32 -> vector<8x128xf32>
    %61 = vector.broadcast %39 : vector<8x1xf32> to vector<8x128xf32>
    %62 = arith.mulf %60, %61 : vector<8x128xf32>
    %c1_i32_18 = arith.constant 1 : i32
    %63 = tpu.dynamic_rotate %1 by %c1_i32_18 dim 0 : vector<8x128xf32>, i32 -> vector<8x128xf32>
    %64 = vector.broadcast %59 : vector<8x1xf32> to vector<8x128xf32>
    %65 = arith.mulf %63, %64 : vector<8x128xf32>
    %cst = arith.constant 0.000000e+00 : f32
    %66 = vector.broadcast %cst : f32 to vector<8x128xf32>
    %cst_19 = arith.constant 0.000000e+00 : f32
    %67 = vector.broadcast %cst_19 : f32 to vector<8x128xf32>
    %cst_20 = arith.constant 0.000000e+00 : f32
    %68 = vector.broadcast %cst_20 : f32 to vector<8x128xf32>
    %c32_i32 = arith.constant 32 : i32
    %69 = tpu.dynamic_rotate %1 by %c32_i32 dim 1 : vector<8x128xf32>, i32 -> vector<8x128xf32>
    %c32_i32_21 = arith.constant 32 : i32
    %70 = tpu.dynamic_rotate %65 by %c32_i32_21 dim 1 : vector<8x128xf32>, i32 -> vector<8x128xf32>
    %c32_i32_22 = arith.constant 32 : i32
    %71 = vector.broadcast %c32_i32_22 : i32 to vector<1x128xi32>
    %72 = arith.cmpi sge, %3, %71 : vector<1x128xi32>
    %73 = vector.shape_cast %72 : vector<1x128xi1> to vector<1x128xi1>
    %74 = vector.broadcast %73 : vector<1x128xi1> to vector<8x128xi1>
    %75 = arith.select %74, %69, %70 : vector<8x128xi1>, vector<8x128xf32>
    %c2_i32_23 = arith.constant 2 : i32
    %76 = tpu.dynamic_rotate %75 by %c2_i32_23 dim 1 : vector<8x128xf32>, i32 -> vector<8x128xf32>
    %c-2_i32 = arith.constant -2 : i32
    %77 = vector.broadcast %c-2_i32 : i32 to vector<1x128xi32>
    %78 = arith.addi %19, %77 : vector<1x128xi32>
    %c0_i32_24 = arith.constant 0 : i32
    %79 = vector.broadcast %c0_i32_24 : i32 to vector<1x128xi32>
    %80 = arith.cmpi sge, %78, %79 : vector<1x128xi32>
    %c-2_i32_25 = arith.constant -2 : i32
    %81 = vector.broadcast %c-2_i32_25 : i32 to vector<1x128xi32>
    %82 = arith.addi %19, %81 : vector<1x128xi32>
    %c16_i32_26 = arith.constant 16 : i32
    %83 = vector.broadcast %c16_i32_26 : i32 to vector<1x128xi32>
    %84 = arith.cmpi slt, %82, %83 : vector<1x128xi32>
    %85 = arith.andi %80, %84 : vector<1x128xi1>
    %cst_27 = arith.constant 0.000000e+00 : f32
    %86 = vector.shape_cast %85 : vector<1x128xi1> to vector<1x128xi1>
    %87 = vector.broadcast %86 : vector<1x128xi1> to vector<8x128xi1>
    %88 = vector.broadcast %cst_27 : f32 to vector<8x128xf32>
    %89 = arith.select %87, %76, %88 : vector<8x128xi1>, vector<8x128xf32>
    %c0_28 = arith.constant 0 : index
    %c0_29 = arith.constant 0 : index
    %c0_30 = arith.constant 0 : index
    %90 = vector.load %arg4[%c0_28, %c0_29, %c0_30] : memref<1x8x26xf32, #tpu.memory_space<vmem>>, vector<1x8x1xf32>
    %91 = vector.shape_cast %90 : vector<1x8x1xf32> to vector<8x1xf32>
    %92 = vector.broadcast %91 : vector<8x1xf32> to vector<8x128xf32>
    %93 = arith.mulf %89, %92 : vector<8x128xf32>
    %94 = arith.addf %68, %93 : vector<8x128xf32>
    %c1_i32_31 = arith.constant 1 : i32
    %95 = tpu.dynamic_rotate %75 by %c1_i32_31 dim 1 : vector<8x128xf32>, i32 -> vector<8x128xf32>
    %c-1_i32 = arith.constant -1 : i32
    %96 = vector.broadcast %c-1_i32 : i32 to vector<1x128xi32>
    %97 = arith.addi %19, %96 : vector<1x128xi32>
    %c0_i32_32 = arith.constant 0 : i32
    %98 = vector.broadcast %c0_i32_32 : i32 to vector<1x128xi32>
    %99 = arith.cmpi sge, %97, %98 : vector<1x128xi32>
    %c-1_i32_33 = arith.constant -1 : i32
    %100 = vector.broadcast %c-1_i32_33 : i32 to vector<1x128xi32>
    %101 = arith.addi %19, %100 : vector<1x128xi32>
    %c16_i32_34 = arith.constant 16 : i32
    %102 = vector.broadcast %c16_i32_34 : i32 to vector<1x128xi32>
    %103 = arith.cmpi slt, %101, %102 : vector<1x128xi32>
    %104 = arith.andi %99, %103 : vector<1x128xi1>
    %cst_35 = arith.constant 0.000000e+00 : f32
    %105 = vector.shape_cast %104 : vector<1x128xi1> to vector<1x128xi1>
    %106 = vector.broadcast %105 : vector<1x128xi1> to vector<8x128xi1>
    %107 = vector.broadcast %cst_35 : f32 to vector<8x128xf32>
    %108 = arith.select %106, %95, %107 : vector<8x128xi1>, vector<8x128xf32>
    %c0_36 = arith.constant 0 : index
    %c0_37 = arith.constant 0 : index
    %c1 = arith.constant 1 : index
    %109 = vector.load %arg4[%c0_36, %c0_37, %c1] : memref<1x8x26xf32, #tpu.memory_space<vmem>>, vector<1x8x1xf32>
    %110 = vector.shape_cast %109 : vector<1x8x1xf32> to vector<8x1xf32>
    %111 = vector.broadcast %110 : vector<8x1xf32> to vector<8x128xf32>
    %112 = arith.mulf %108, %111 : vector<8x128xf32>
    %113 = arith.addf %94, %112 : vector<8x128xf32>
    %c0_38 = arith.constant 0 : index
    %c0_39 = arith.constant 0 : index
    %c2 = arith.constant 2 : index
    %114 = vector.load %arg4[%c0_38, %c0_39, %c2] : memref<1x8x26xf32, #tpu.memory_space<vmem>>, vector<1x8x1xf32>
    %115 = vector.shape_cast %114 : vector<1x8x1xf32> to vector<8x1xf32>
    %116 = vector.broadcast %115 : vector<8x1xf32> to vector<8x128xf32>
    %117 = arith.mulf %75, %116 : vector<8x128xf32>
    %118 = arith.addf %113, %117 : vector<8x128xf32>
    %c127_i32 = arith.constant 127 : i32
    %119 = tpu.dynamic_rotate %75 by %c127_i32 dim 1 : vector<8x128xf32>, i32 -> vector<8x128xf32>
    %c1_i32_40 = arith.constant 1 : i32
    %120 = vector.broadcast %c1_i32_40 : i32 to vector<1x128xi32>
    %121 = arith.addi %19, %120 : vector<1x128xi32>
    %c0_i32_41 = arith.constant 0 : i32
    %122 = vector.broadcast %c0_i32_41 : i32 to vector<1x128xi32>
    %123 = arith.cmpi sge, %121, %122 : vector<1x128xi32>
    %c1_i32_42 = arith.constant 1 : i32
    %124 = vector.broadcast %c1_i32_42 : i32 to vector<1x128xi32>
    %125 = arith.addi %19, %124 : vector<1x128xi32>
    %c16_i32_43 = arith.constant 16 : i32
    %126 = vector.broadcast %c16_i32_43 : i32 to vector<1x128xi32>
    %127 = arith.cmpi slt, %125, %126 : vector<1x128xi32>
    %128 = arith.andi %123, %127 : vector<1x128xi1>
    %cst_44 = arith.constant 0.000000e+00 : f32
    %129 = vector.shape_cast %128 : vector<1x128xi1> to vector<1x128xi1>
    %130 = vector.broadcast %129 : vector<1x128xi1> to vector<8x128xi1>
    %131 = vector.broadcast %cst_44 : f32 to vector<8x128xf32>
    %132 = arith.select %130, %119, %131 : vector<8x128xi1>, vector<8x128xf32>
    %c0_45 = arith.constant 0 : index
    %c0_46 = arith.constant 0 : index
    %c3 = arith.constant 3 : index
    %133 = vector.load %arg4[%c0_45, %c0_46, %c3] : memref<1x8x26xf32, #tpu.memory_space<vmem>>, vector<1x8x1xf32>
    %134 = vector.shape_cast %133 : vector<1x8x1xf32> to vector<8x1xf32>
    %135 = vector.broadcast %134 : vector<8x1xf32> to vector<8x128xf32>
    %136 = arith.mulf %132, %135 : vector<8x128xf32>
    %137 = arith.addf %118, %136 : vector<8x128xf32>
    %c126_i32 = arith.constant 126 : i32
    %138 = tpu.dynamic_rotate %75 by %c126_i32 dim 1 : vector<8x128xf32>, i32 -> vector<8x128xf32>
    %c2_i32_47 = arith.constant 2 : i32
    %139 = vector.broadcast %c2_i32_47 : i32 to vector<1x128xi32>
    %140 = arith.addi %19, %139 : vector<1x128xi32>
    %c0_i32_48 = arith.constant 0 : i32
    %141 = vector.broadcast %c0_i32_48 : i32 to vector<1x128xi32>
    %142 = arith.cmpi sge, %140, %141 : vector<1x128xi32>
    %c2_i32_49 = arith.constant 2 : i32
    %143 = vector.broadcast %c2_i32_49 : i32 to vector<1x128xi32>
    %144 = arith.addi %19, %143 : vector<1x128xi32>
    %c16_i32_50 = arith.constant 16 : i32
    %145 = vector.broadcast %c16_i32_50 : i32 to vector<1x128xi32>
    %146 = arith.cmpi slt, %144, %145 : vector<1x128xi32>
    %147 = arith.andi %142, %146 : vector<1x128xi1>
    %cst_51 = arith.constant 0.000000e+00 : f32
    %148 = vector.shape_cast %147 : vector<1x128xi1> to vector<1x128xi1>
    %149 = vector.broadcast %148 : vector<1x128xi1> to vector<8x128xi1>
    %150 = vector.broadcast %cst_51 : f32 to vector<8x128xf32>
    %151 = arith.select %149, %138, %150 : vector<8x128xi1>, vector<8x128xf32>
    %c0_52 = arith.constant 0 : index
    %c0_53 = arith.constant 0 : index
    %c4 = arith.constant 4 : index
    %152 = vector.load %arg4[%c0_52, %c0_53, %c4] : memref<1x8x26xf32, #tpu.memory_space<vmem>>, vector<1x8x1xf32>
    %153 = vector.shape_cast %152 : vector<1x8x1xf32> to vector<8x1xf32>
    %154 = vector.broadcast %153 : vector<8x1xf32> to vector<8x128xf32>
    %155 = arith.mulf %151, %154 : vector<8x128xf32>
    %156 = arith.addf %137, %155 : vector<8x128xf32>
    %c16_i32_54 = arith.constant 16 : i32
    %157 = tpu.dynamic_rotate %1 by %c16_i32_54 dim 1 : vector<8x128xf32>, i32 -> vector<8x128xf32>
    %c16_i32_55 = arith.constant 16 : i32
    %158 = tpu.dynamic_rotate %65 by %c16_i32_55 dim 1 : vector<8x128xf32>, i32 -> vector<8x128xf32>
    %c16_i32_56 = arith.constant 16 : i32
    %159 = vector.broadcast %c16_i32_56 : i32 to vector<1x128xi32>
    %160 = arith.cmpi sge, %3, %159 : vector<1x128xi32>
    %161 = vector.shape_cast %160 : vector<1x128xi1> to vector<1x128xi1>
    %162 = vector.broadcast %161 : vector<1x128xi1> to vector<8x128xi1>
    %163 = arith.select %162, %157, %158 : vector<8x128xi1>, vector<8x128xf32>
    %c2_i32_57 = arith.constant 2 : i32
    %164 = tpu.dynamic_rotate %163 by %c2_i32_57 dim 1 : vector<8x128xf32>, i32 -> vector<8x128xf32>
    %c-2_i32_58 = arith.constant -2 : i32
    %165 = vector.broadcast %c-2_i32_58 : i32 to vector<1x128xi32>
    %166 = arith.addi %19, %165 : vector<1x128xi32>
    %c0_i32_59 = arith.constant 0 : i32
    %167 = vector.broadcast %c0_i32_59 : i32 to vector<1x128xi32>
    %168 = arith.cmpi sge, %166, %167 : vector<1x128xi32>
    %c-2_i32_60 = arith.constant -2 : i32
    %169 = vector.broadcast %c-2_i32_60 : i32 to vector<1x128xi32>
    %170 = arith.addi %19, %169 : vector<1x128xi32>
    %c16_i32_61 = arith.constant 16 : i32
    %171 = vector.broadcast %c16_i32_61 : i32 to vector<1x128xi32>
    %172 = arith.cmpi slt, %170, %171 : vector<1x128xi32>
    %173 = arith.andi %168, %172 : vector<1x128xi1>
    %cst_62 = arith.constant 0.000000e+00 : f32
    %174 = vector.shape_cast %173 : vector<1x128xi1> to vector<1x128xi1>
    %175 = vector.broadcast %174 : vector<1x128xi1> to vector<8x128xi1>
    %176 = vector.broadcast %cst_62 : f32 to vector<8x128xf32>
    %177 = arith.select %175, %164, %176 : vector<8x128xi1>, vector<8x128xf32>
    %c0_63 = arith.constant 0 : index
    %c0_64 = arith.constant 0 : index
    %c5 = arith.constant 5 : index
    %178 = vector.load %arg4[%c0_63, %c0_64, %c5] : memref<1x8x26xf32, #tpu.memory_space<vmem>>, vector<1x8x1xf32>
    %179 = vector.shape_cast %178 : vector<1x8x1xf32> to vector<8x1xf32>
    %180 = vector.broadcast %179 : vector<8x1xf32> to vector<8x128xf32>
    %181 = arith.mulf %177, %180 : vector<8x128xf32>
    %182 = arith.addf %156, %181 : vector<8x128xf32>
    %c1_i32_65 = arith.constant 1 : i32
    %183 = tpu.dynamic_rotate %163 by %c1_i32_65 dim 1 : vector<8x128xf32>, i32 -> vector<8x128xf32>
    %c-1_i32_66 = arith.constant -1 : i32
    %184 = vector.broadcast %c-1_i32_66 : i32 to vector<1x128xi32>
    %185 = arith.addi %19, %184 : vector<1x128xi32>
    %c0_i32_67 = arith.constant 0 : i32
    %186 = vector.broadcast %c0_i32_67 : i32 to vector<1x128xi32>
    %187 = arith.cmpi sge, %185, %186 : vector<1x128xi32>
    %c-1_i32_68 = arith.constant -1 : i32
    %188 = vector.broadcast %c-1_i32_68 : i32 to vector<1x128xi32>
    %189 = arith.addi %19, %188 : vector<1x128xi32>
    %c16_i32_69 = arith.constant 16 : i32
    %190 = vector.broadcast %c16_i32_69 : i32 to vector<1x128xi32>
    %191 = arith.cmpi slt, %189, %190 : vector<1x128xi32>
    %192 = arith.andi %187, %191 : vector<1x128xi1>
    %cst_70 = arith.constant 0.000000e+00 : f32
    %193 = vector.shape_cast %192 : vector<1x128xi1> to vector<1x128xi1>
    %194 = vector.broadcast %193 : vector<1x128xi1> to vector<8x128xi1>
    %195 = vector.broadcast %cst_70 : f32 to vector<8x128xf32>
    %196 = arith.select %194, %183, %195 : vector<8x128xi1>, vector<8x128xf32>
    %c0_71 = arith.constant 0 : index
    %c0_72 = arith.constant 0 : index
    %c0_73 = arith.constant 0 : index
    %197 = vector.load %arg3[%c0_71, %c0_72, %c0_73] : memref<1x8x10xf32, #tpu.memory_space<vmem>>, vector<1x8x1xf32>
    %198 = vector.shape_cast %197 : vector<1x8x1xf32> to vector<8x1xf32>
    %199 = vector.broadcast %198 : vector<8x1xf32> to vector<8x128xf32>
    %200 = arith.mulf %196, %199 : vector<8x128xf32>
    %201 = arith.addf %67, %200 : vector<8x128xf32>
    %c0_74 = arith.constant 0 : index
    %c0_75 = arith.constant 0 : index
    %c6 = arith.constant 6 : index
    %202 = vector.load %arg4[%c0_74, %c0_75, %c6] : memref<1x8x26xf32, #tpu.memory_space<vmem>>, vector<1x8x1xf32>
    %203 = vector.shape_cast %202 : vector<1x8x1xf32> to vector<8x1xf32>
    %204 = vector.broadcast %203 : vector<8x1xf32> to vector<8x128xf32>
    %205 = arith.mulf %196, %204 : vector<8x128xf32>
    %206 = arith.addf %182, %205 : vector<8x128xf32>
    %c0_76 = arith.constant 0 : index
    %c0_77 = arith.constant 0 : index
    %c1_78 = arith.constant 1 : index
    %207 = vector.load %arg3[%c0_76, %c0_77, %c1_78] : memref<1x8x10xf32, #tpu.memory_space<vmem>>, vector<1x8x1xf32>
    %208 = vector.shape_cast %207 : vector<1x8x1xf32> to vector<8x1xf32>
    %209 = vector.broadcast %208 : vector<8x1xf32> to vector<8x128xf32>
    %210 = arith.mulf %163, %209 : vector<8x128xf32>
    %211 = arith.addf %201, %210 : vector<8x128xf32>
    %c0_79 = arith.constant 0 : index
    %c0_80 = arith.constant 0 : index
    %c7 = arith.constant 7 : index
    %212 = vector.load %arg4[%c0_79, %c0_80, %c7] : memref<1x8x26xf32, #tpu.memory_space<vmem>>, vector<1x8x1xf32>
    %213 = vector.shape_cast %212 : vector<1x8x1xf32> to vector<8x1xf32>
    %214 = vector.broadcast %213 : vector<8x1xf32> to vector<8x128xf32>
    %215 = arith.mulf %163, %214 : vector<8x128xf32>
    %216 = arith.addf %206, %215 : vector<8x128xf32>
    %c127_i32_81 = arith.constant 127 : i32
    %217 = tpu.dynamic_rotate %163 by %c127_i32_81 dim 1 : vector<8x128xf32>, i32 -> vector<8x128xf32>
    %c1_i32_82 = arith.constant 1 : i32
    %218 = vector.broadcast %c1_i32_82 : i32 to vector<1x128xi32>
    %219 = arith.addi %19, %218 : vector<1x128xi32>
    %c0_i32_83 = arith.constant 0 : i32
    %220 = vector.broadcast %c0_i32_83 : i32 to vector<1x128xi32>
    %221 = arith.cmpi sge, %219, %220 : vector<1x128xi32>
    %c1_i32_84 = arith.constant 1 : i32
    %222 = vector.broadcast %c1_i32_84 : i32 to vector<1x128xi32>
    %223 = arith.addi %19, %222 : vector<1x128xi32>
    %c16_i32_85 = arith.constant 16 : i32
    %224 = vector.broadcast %c16_i32_85 : i32 to vector<1x128xi32>
    %225 = arith.cmpi slt, %223, %224 : vector<1x128xi32>
    %226 = arith.andi %221, %225 : vector<1x128xi1>
    %cst_86 = arith.constant 0.000000e+00 : f32
    %227 = vector.shape_cast %226 : vector<1x128xi1> to vector<1x128xi1>
    %228 = vector.broadcast %227 : vector<1x128xi1> to vector<8x128xi1>
    %229 = vector.broadcast %cst_86 : f32 to vector<8x128xf32>
    %230 = arith.select %228, %217, %229 : vector<8x128xi1>, vector<8x128xf32>
    %c0_87 = arith.constant 0 : index
    %c0_88 = arith.constant 0 : index
    %c2_89 = arith.constant 2 : index
    %231 = vector.load %arg3[%c0_87, %c0_88, %c2_89] : memref<1x8x10xf32, #tpu.memory_space<vmem>>, vector<1x8x1xf32>
    %232 = vector.shape_cast %231 : vector<1x8x1xf32> to vector<8x1xf32>
    %233 = vector.broadcast %232 : vector<8x1xf32> to vector<8x128xf32>
    %234 = arith.mulf %230, %233 : vector<8x128xf32>
    %235 = arith.addf %211, %234 : vector<8x128xf32>
    %c0_90 = arith.constant 0 : index
    %c0_91 = arith.constant 0 : index
    %c8 = arith.constant 8 : index
    %236 = vector.load %arg4[%c0_90, %c0_91, %c8] : memref<1x8x26xf32, #tpu.memory_space<vmem>>, vector<1x8x1xf32>
    %237 = vector.shape_cast %236 : vector<1x8x1xf32> to vector<8x1xf32>
    %238 = vector.broadcast %237 : vector<8x1xf32> to vector<8x128xf32>
    %239 = arith.mulf %230, %238 : vector<8x128xf32>
    %240 = arith.addf %216, %239 : vector<8x128xf32>
    %c126_i32_92 = arith.constant 126 : i32
    %241 = tpu.dynamic_rotate %163 by %c126_i32_92 dim 1 : vector<8x128xf32>, i32 -> vector<8x128xf32>
    %c2_i32_93 = arith.constant 2 : i32
    %242 = vector.broadcast %c2_i32_93 : i32 to vector<1x128xi32>
    %243 = arith.addi %19, %242 : vector<1x128xi32>
    %c0_i32_94 = arith.constant 0 : i32
    %244 = vector.broadcast %c0_i32_94 : i32 to vector<1x128xi32>
    %245 = arith.cmpi sge, %243, %244 : vector<1x128xi32>
    %c2_i32_95 = arith.constant 2 : i32
    %246 = vector.broadcast %c2_i32_95 : i32 to vector<1x128xi32>
    %247 = arith.addi %19, %246 : vector<1x128xi32>
    %c16_i32_96 = arith.constant 16 : i32
    %248 = vector.broadcast %c16_i32_96 : i32 to vector<1x128xi32>
    %249 = arith.cmpi slt, %247, %248 : vector<1x128xi32>
    %250 = arith.andi %245, %249 : vector<1x128xi1>
    %cst_97 = arith.constant 0.000000e+00 : f32
    %251 = vector.shape_cast %250 : vector<1x128xi1> to vector<1x128xi1>
    %252 = vector.broadcast %251 : vector<1x128xi1> to vector<8x128xi1>
    %253 = vector.broadcast %cst_97 : f32 to vector<8x128xf32>
    %254 = arith.select %252, %241, %253 : vector<8x128xi1>, vector<8x128xf32>
    %c0_98 = arith.constant 0 : index
    %c0_99 = arith.constant 0 : index
    %c9 = arith.constant 9 : index
    %255 = vector.load %arg4[%c0_98, %c0_99, %c9] : memref<1x8x26xf32, #tpu.memory_space<vmem>>, vector<1x8x1xf32>
    %256 = vector.shape_cast %255 : vector<1x8x1xf32> to vector<8x1xf32>
    %257 = vector.broadcast %256 : vector<8x1xf32> to vector<8x128xf32>
    %258 = arith.mulf %254, %257 : vector<8x128xf32>
    %259 = arith.addf %240, %258 : vector<8x128xf32>
    %c2_i32_100 = arith.constant 2 : i32
    %260 = tpu.dynamic_rotate %1 by %c2_i32_100 dim 1 : vector<8x128xf32>, i32 -> vector<8x128xf32>
    %c-2_i32_101 = arith.constant -2 : i32
    %261 = vector.broadcast %c-2_i32_101 : i32 to vector<1x128xi32>
    %262 = arith.addi %19, %261 : vector<1x128xi32>
    %c0_i32_102 = arith.constant 0 : i32
    %263 = vector.broadcast %c0_i32_102 : i32 to vector<1x128xi32>
    %264 = arith.cmpi sge, %262, %263 : vector<1x128xi32>
    %c-2_i32_103 = arith.constant -2 : i32
    %265 = vector.broadcast %c-2_i32_103 : i32 to vector<1x128xi32>
    %266 = arith.addi %19, %265 : vector<1x128xi32>
    %c16_i32_104 = arith.constant 16 : i32
    %267 = vector.broadcast %c16_i32_104 : i32 to vector<1x128xi32>
    %268 = arith.cmpi slt, %266, %267 : vector<1x128xi32>
    %269 = arith.andi %264, %268 : vector<1x128xi1>
    %cst_105 = arith.constant 0.000000e+00 : f32
    %270 = vector.shape_cast %269 : vector<1x128xi1> to vector<1x128xi1>
    %271 = vector.broadcast %270 : vector<1x128xi1> to vector<8x128xi1>
    %272 = vector.broadcast %cst_105 : f32 to vector<8x128xf32>
    %273 = arith.select %271, %260, %272 : vector<8x128xi1>, vector<8x128xf32>
    %c0_106 = arith.constant 0 : index
    %c0_107 = arith.constant 0 : index
    %c10 = arith.constant 10 : index
    %274 = vector.load %arg4[%c0_106, %c0_107, %c10] : memref<1x8x26xf32, #tpu.memory_space<vmem>>, vector<1x8x1xf32>
    %275 = vector.shape_cast %274 : vector<1x8x1xf32> to vector<8x1xf32>
    %276 = vector.broadcast %275 : vector<8x1xf32> to vector<8x128xf32>
    %277 = arith.mulf %273, %276 : vector<8x128xf32>
    %278 = arith.addf %259, %277 : vector<8x128xf32>
    %c1_i32_108 = arith.constant 1 : i32
    %279 = tpu.dynamic_rotate %1 by %c1_i32_108 dim 1 : vector<8x128xf32>, i32 -> vector<8x128xf32>
    %c-1_i32_109 = arith.constant -1 : i32
    %280 = vector.broadcast %c-1_i32_109 : i32 to vector<1x128xi32>
    %281 = arith.addi %19, %280 : vector<1x128xi32>
    %c0_i32_110 = arith.constant 0 : i32
    %282 = vector.broadcast %c0_i32_110 : i32 to vector<1x128xi32>
    %283 = arith.cmpi sge, %281, %282 : vector<1x128xi32>
    %c-1_i32_111 = arith.constant -1 : i32
    %284 = vector.broadcast %c-1_i32_111 : i32 to vector<1x128xi32>
    %285 = arith.addi %19, %284 : vector<1x128xi32>
    %c16_i32_112 = arith.constant 16 : i32
    %286 = vector.broadcast %c16_i32_112 : i32 to vector<1x128xi32>
    %287 = arith.cmpi slt, %285, %286 : vector<1x128xi32>
    %288 = arith.andi %283, %287 : vector<1x128xi1>
    %cst_113 = arith.constant 0.000000e+00 : f32
    %289 = vector.shape_cast %288 : vector<1x128xi1> to vector<1x128xi1>
    %290 = vector.broadcast %289 : vector<1x128xi1> to vector<8x128xi1>
    %291 = vector.broadcast %cst_113 : f32 to vector<8x128xf32>
    %292 = arith.select %290, %279, %291 : vector<8x128xi1>, vector<8x128xf32>
    %c0_114 = arith.constant 0 : index
    %c0_115 = arith.constant 0 : index
    %c3_116 = arith.constant 3 : index
    %293 = vector.load %arg3[%c0_114, %c0_115, %c3_116] : memref<1x8x10xf32, #tpu.memory_space<vmem>>, vector<1x8x1xf32>
    %294 = vector.shape_cast %293 : vector<1x8x1xf32> to vector<8x1xf32>
    %295 = vector.broadcast %294 : vector<8x1xf32> to vector<8x128xf32>
    %296 = arith.mulf %292, %295 : vector<8x128xf32>
    %297 = arith.addf %235, %296 : vector<8x128xf32>
    %c0_117 = arith.constant 0 : index
    %c0_118 = arith.constant 0 : index
    %c11 = arith.constant 11 : index
    %298 = vector.load %arg4[%c0_117, %c0_118, %c11] : memref<1x8x26xf32, #tpu.memory_space<vmem>>, vector<1x8x1xf32>
    %299 = vector.shape_cast %298 : vector<1x8x1xf32> to vector<8x1xf32>
    %300 = vector.broadcast %299 : vector<8x1xf32> to vector<8x128xf32>
    %301 = arith.mulf %292, %300 : vector<8x128xf32>
    %302 = arith.addf %278, %301 : vector<8x128xf32>
    %c0_119 = arith.constant 0 : index
    %c0_120 = arith.constant 0 : index
    %c0_121 = arith.constant 0 : index
    %303 = vector.load %arg2[%c0_119, %c0_120, %c0_121] : memref<1x8x2xf32, #tpu.memory_space<vmem>>, vector<1x8x1xf32>
    %304 = vector.shape_cast %303 : vector<1x8x1xf32> to vector<8x1xf32>
    %305 = vector.broadcast %304 : vector<8x1xf32> to vector<8x128xf32>
    %306 = arith.mulf %1, %305 : vector<8x128xf32>
    %307 = arith.addf %66, %306 : vector<8x128xf32>
    %c0_122 = arith.constant 0 : index
    %c0_123 = arith.constant 0 : index
    %c4_124 = arith.constant 4 : index
    %308 = vector.load %arg3[%c0_122, %c0_123, %c4_124] : memref<1x8x10xf32, #tpu.memory_space<vmem>>, vector<1x8x1xf32>
    %309 = vector.shape_cast %308 : vector<1x8x1xf32> to vector<8x1xf32>
    %310 = vector.broadcast %309 : vector<8x1xf32> to vector<8x128xf32>
    %311 = arith.mulf %1, %310 : vector<8x128xf32>
    %312 = arith.addf %297, %311 : vector<8x128xf32>
    %c0_125 = arith.constant 0 : index
    %c0_126 = arith.constant 0 : index
    %c12 = arith.constant 12 : index
    %313 = vector.load %arg4[%c0_125, %c0_126, %c12] : memref<1x8x26xf32, #tpu.memory_space<vmem>>, vector<1x8x1xf32>
    %314 = vector.shape_cast %313 : vector<1x8x1xf32> to vector<8x1xf32>
    %315 = vector.broadcast %314 : vector<8x1xf32> to vector<8x128xf32>
    %316 = arith.mulf %1, %315 : vector<8x128xf32>
    %317 = arith.addf %302, %316 : vector<8x128xf32>
    %c127_i32_127 = arith.constant 127 : i32
    %318 = tpu.dynamic_rotate %1 by %c127_i32_127 dim 1 : vector<8x128xf32>, i32 -> vector<8x128xf32>
    %c1_i32_128 = arith.constant 1 : i32
    %319 = vector.broadcast %c1_i32_128 : i32 to vector<1x128xi32>
    %320 = arith.addi %19, %319 : vector<1x128xi32>
    %c0_i32_129 = arith.constant 0 : i32
    %321 = vector.broadcast %c0_i32_129 : i32 to vector<1x128xi32>
    %322 = arith.cmpi sge, %320, %321 : vector<1x128xi32>
    %c1_i32_130 = arith.constant 1 : i32
    %323 = vector.broadcast %c1_i32_130 : i32 to vector<1x128xi32>
    %324 = arith.addi %19, %323 : vector<1x128xi32>
    %c16_i32_131 = arith.constant 16 : i32
    %325 = vector.broadcast %c16_i32_131 : i32 to vector<1x128xi32>
    %326 = arith.cmpi slt, %324, %325 : vector<1x128xi32>
    %327 = arith.andi %322, %326 : vector<1x128xi1>
    %cst_132 = arith.constant 0.000000e+00 : f32
    %328 = vector.shape_cast %327 : vector<1x128xi1> to vector<1x128xi1>
    %329 = vector.broadcast %328 : vector<1x128xi1> to vector<8x128xi1>
    %330 = vector.broadcast %cst_132 : f32 to vector<8x128xf32>
    %331 = arith.select %329, %318, %330 : vector<8x128xi1>, vector<8x128xf32>
    %c0_133 = arith.constant 0 : index
    %c0_134 = arith.constant 0 : index
    %c5_135 = arith.constant 5 : index
    %332 = vector.load %arg3[%c0_133, %c0_134, %c5_135] : memref<1x8x10xf32, #tpu.memory_space<vmem>>, vector<1x8x1xf32>
    %333 = vector.shape_cast %332 : vector<1x8x1xf32> to vector<8x1xf32>
    %334 = vector.broadcast %333 : vector<8x1xf32> to vector<8x128xf32>
    %335 = arith.mulf %331, %334 : vector<8x128xf32>
    %336 = arith.addf %312, %335 : vector<8x128xf32>
    %c0_136 = arith.constant 0 : index
    %c0_137 = arith.constant 0 : index
    %c13 = arith.constant 13 : index
    %337 = vector.load %arg4[%c0_136, %c0_137, %c13] : memref<1x8x26xf32, #tpu.memory_space<vmem>>, vector<1x8x1xf32>
    %338 = vector.shape_cast %337 : vector<1x8x1xf32> to vector<8x1xf32>
    %339 = vector.broadcast %338 : vector<8x1xf32> to vector<8x128xf32>
    %340 = arith.mulf %331, %339 : vector<8x128xf32>
    %341 = arith.addf %317, %340 : vector<8x128xf32>
    %c126_i32_138 = arith.constant 126 : i32
    %342 = tpu.dynamic_rotate %1 by %c126_i32_138 dim 1 : vector<8x128xf32>, i32 -> vector<8x128xf32>
    %c2_i32_139 = arith.constant 2 : i32
    %343 = vector.broadcast %c2_i32_139 : i32 to vector<1x128xi32>
    %344 = arith.addi %19, %343 : vector<1x128xi32>
    %c0_i32_140 = arith.constant 0 : i32
    %345 = vector.broadcast %c0_i32_140 : i32 to vector<1x128xi32>
    %346 = arith.cmpi sge, %344, %345 : vector<1x128xi32>
    %c2_i32_141 = arith.constant 2 : i32
    %347 = vector.broadcast %c2_i32_141 : i32 to vector<1x128xi32>
    %348 = arith.addi %19, %347 : vector<1x128xi32>
    %c16_i32_142 = arith.constant 16 : i32
    %349 = vector.broadcast %c16_i32_142 : i32 to vector<1x128xi32>
    %350 = arith.cmpi slt, %348, %349 : vector<1x128xi32>
    %351 = arith.andi %346, %350 : vector<1x128xi1>
    %cst_143 = arith.constant 0.000000e+00 : f32
    %352 = vector.shape_cast %351 : vector<1x128xi1> to vector<1x128xi1>
    %353 = vector.broadcast %352 : vector<1x128xi1> to vector<8x128xi1>
    %354 = vector.broadcast %cst_143 : f32 to vector<8x128xf32>
    %355 = arith.select %353, %342, %354 : vector<8x128xi1>, vector<8x128xf32>
    %c0_144 = arith.constant 0 : index
    %c0_145 = arith.constant 0 : index
    %c14 = arith.constant 14 : index
    %356 = vector.load %arg4[%c0_144, %c0_145, %c14] : memref<1x8x26xf32, #tpu.memory_space<vmem>>, vector<1x8x1xf32>
    %357 = vector.shape_cast %356 : vector<1x8x1xf32> to vector<8x1xf32>
    %358 = vector.broadcast %357 : vector<8x1xf32> to vector<8x128xf32>
    %359 = arith.mulf %355, %358 : vector<8x128xf32>
    %360 = arith.addf %341, %359 : vector<8x128xf32>
    %c112_i32 = arith.constant 112 : i32
    %361 = tpu.dynamic_rotate %1 by %c112_i32 dim 1 : vector<8x128xf32>, i32 -> vector<8x128xf32>
    %c112_i32_146 = arith.constant 112 : i32
    %362 = tpu.dynamic_rotate %62 by %c112_i32_146 dim 1 : vector<8x128xf32>, i32 -> vector<8x128xf32>
    %c112_i32_147 = arith.constant 112 : i32
    %363 = vector.broadcast %c112_i32_147 : i32 to vector<1x128xi32>
    %364 = arith.cmpi slt, %3, %363 : vector<1x128xi32>
    %365 = vector.shape_cast %364 : vector<1x128xi1> to vector<1x128xi1>
    %366 = vector.broadcast %365 : vector<1x128xi1> to vector<8x128xi1>
    %367 = arith.select %366, %361, %362 : vector<8x128xi1>, vector<8x128xf32>
    %c2_i32_148 = arith.constant 2 : i32
    %368 = tpu.dynamic_rotate %367 by %c2_i32_148 dim 1 : vector<8x128xf32>, i32 -> vector<8x128xf32>
    %c-2_i32_149 = arith.constant -2 : i32
    %369 = vector.broadcast %c-2_i32_149 : i32 to vector<1x128xi32>
    %370 = arith.addi %19, %369 : vector<1x128xi32>
    %c0_i32_150 = arith.constant 0 : i32
    %371 = vector.broadcast %c0_i32_150 : i32 to vector<1x128xi32>
    %372 = arith.cmpi sge, %370, %371 : vector<1x128xi32>
    %c-2_i32_151 = arith.constant -2 : i32
    %373 = vector.broadcast %c-2_i32_151 : i32 to vector<1x128xi32>
    %374 = arith.addi %19, %373 : vector<1x128xi32>
    %c16_i32_152 = arith.constant 16 : i32
    %375 = vector.broadcast %c16_i32_152 : i32 to vector<1x128xi32>
    %376 = arith.cmpi slt, %374, %375 : vector<1x128xi32>
    %377 = arith.andi %372, %376 : vector<1x128xi1>
    %cst_153 = arith.constant 0.000000e+00 : f32
    %378 = vector.shape_cast %377 : vector<1x128xi1> to vector<1x128xi1>
    %379 = vector.broadcast %378 : vector<1x128xi1> to vector<8x128xi1>
    %380 = vector.broadcast %cst_153 : f32 to vector<8x128xf32>
    %381 = arith.select %379, %368, %380 : vector<8x128xi1>, vector<8x128xf32>
    %c0_154 = arith.constant 0 : index
    %c0_155 = arith.constant 0 : index
    %c15 = arith.constant 15 : index
    %382 = vector.load %arg4[%c0_154, %c0_155, %c15] : memref<1x8x26xf32, #tpu.memory_space<vmem>>, vector<1x8x1xf32>
    %383 = vector.shape_cast %382 : vector<1x8x1xf32> to vector<8x1xf32>
    %384 = vector.broadcast %383 : vector<8x1xf32> to vector<8x128xf32>
    %385 = arith.mulf %381, %384 : vector<8x128xf32>
    %386 = arith.addf %360, %385 : vector<8x128xf32>
    %c1_i32_156 = arith.constant 1 : i32
    %387 = tpu.dynamic_rotate %367 by %c1_i32_156 dim 1 : vector<8x128xf32>, i32 -> vector<8x128xf32>
    %c-1_i32_157 = arith.constant -1 : i32
    %388 = vector.broadcast %c-1_i32_157 : i32 to vector<1x128xi32>
    %389 = arith.addi %19, %388 : vector<1x128xi32>
    %c0_i32_158 = arith.constant 0 : i32
    %390 = vector.broadcast %c0_i32_158 : i32 to vector<1x128xi32>
    %391 = arith.cmpi sge, %389, %390 : vector<1x128xi32>
    %c-1_i32_159 = arith.constant -1 : i32
    %392 = vector.broadcast %c-1_i32_159 : i32 to vector<1x128xi32>
    %393 = arith.addi %19, %392 : vector<1x128xi32>
    %c16_i32_160 = arith.constant 16 : i32
    %394 = vector.broadcast %c16_i32_160 : i32 to vector<1x128xi32>
    %395 = arith.cmpi slt, %393, %394 : vector<1x128xi32>
    %396 = arith.andi %391, %395 : vector<1x128xi1>
    %cst_161 = arith.constant 0.000000e+00 : f32
    %397 = vector.shape_cast %396 : vector<1x128xi1> to vector<1x128xi1>
    %398 = vector.broadcast %397 : vector<1x128xi1> to vector<8x128xi1>
    %399 = vector.broadcast %cst_161 : f32 to vector<8x128xf32>
    %400 = arith.select %398, %387, %399 : vector<8x128xi1>, vector<8x128xf32>
    %c0_162 = arith.constant 0 : index
    %c0_163 = arith.constant 0 : index
    %c6_164 = arith.constant 6 : index
    %401 = vector.load %arg3[%c0_162, %c0_163, %c6_164] : memref<1x8x10xf32, #tpu.memory_space<vmem>>, vector<1x8x1xf32>
    %402 = vector.shape_cast %401 : vector<1x8x1xf32> to vector<8x1xf32>
    %403 = vector.broadcast %402 : vector<8x1xf32> to vector<8x128xf32>
    %404 = arith.mulf %400, %403 : vector<8x128xf32>
    %405 = arith.addf %336, %404 : vector<8x128xf32>
    %c0_165 = arith.constant 0 : index
    %c0_166 = arith.constant 0 : index
    %c16 = arith.constant 16 : index
    %406 = vector.load %arg4[%c0_165, %c0_166, %c16] : memref<1x8x26xf32, #tpu.memory_space<vmem>>, vector<1x8x1xf32>
    %407 = vector.shape_cast %406 : vector<1x8x1xf32> to vector<8x1xf32>
    %408 = vector.broadcast %407 : vector<8x1xf32> to vector<8x128xf32>
    %409 = arith.mulf %400, %408 : vector<8x128xf32>
    %410 = arith.addf %386, %409 : vector<8x128xf32>
    %c0_167 = arith.constant 0 : index
    %c0_168 = arith.constant 0 : index
    %c7_169 = arith.constant 7 : index
    %411 = vector.load %arg3[%c0_167, %c0_168, %c7_169] : memref<1x8x10xf32, #tpu.memory_space<vmem>>, vector<1x8x1xf32>
    %412 = vector.shape_cast %411 : vector<1x8x1xf32> to vector<8x1xf32>
    %413 = vector.broadcast %412 : vector<8x1xf32> to vector<8x128xf32>
    %414 = arith.mulf %367, %413 : vector<8x128xf32>
    %415 = arith.addf %405, %414 : vector<8x128xf32>
    %c0_170 = arith.constant 0 : index
    %c0_171 = arith.constant 0 : index
    %c17 = arith.constant 17 : index
    %416 = vector.load %arg4[%c0_170, %c0_171, %c17] : memref<1x8x26xf32, #tpu.memory_space<vmem>>, vector<1x8x1xf32>
    %417 = vector.shape_cast %416 : vector<1x8x1xf32> to vector<8x1xf32>
    %418 = vector.broadcast %417 : vector<8x1xf32> to vector<8x128xf32>
    %419 = arith.mulf %367, %418 : vector<8x128xf32>
    %420 = arith.addf %410, %419 : vector<8x128xf32>
    %c127_i32_172 = arith.constant 127 : i32
    %421 = tpu.dynamic_rotate %367 by %c127_i32_172 dim 1 : vector<8x128xf32>, i32 -> vector<8x128xf32>
    %c1_i32_173 = arith.constant 1 : i32
    %422 = vector.broadcast %c1_i32_173 : i32 to vector<1x128xi32>
    %423 = arith.addi %19, %422 : vector<1x128xi32>
    %c0_i32_174 = arith.constant 0 : i32
    %424 = vector.broadcast %c0_i32_174 : i32 to vector<1x128xi32>
    %425 = arith.cmpi sge, %423, %424 : vector<1x128xi32>
    %c1_i32_175 = arith.constant 1 : i32
    %426 = vector.broadcast %c1_i32_175 : i32 to vector<1x128xi32>
    %427 = arith.addi %19, %426 : vector<1x128xi32>
    %c16_i32_176 = arith.constant 16 : i32
    %428 = vector.broadcast %c16_i32_176 : i32 to vector<1x128xi32>
    %429 = arith.cmpi slt, %427, %428 : vector<1x128xi32>
    %430 = arith.andi %425, %429 : vector<1x128xi1>
    %cst_177 = arith.constant 0.000000e+00 : f32
    %431 = vector.shape_cast %430 : vector<1x128xi1> to vector<1x128xi1>
    %432 = vector.broadcast %431 : vector<1x128xi1> to vector<8x128xi1>
    %433 = vector.broadcast %cst_177 : f32 to vector<8x128xf32>
    %434 = arith.select %432, %421, %433 : vector<8x128xi1>, vector<8x128xf32>
    %c0_178 = arith.constant 0 : index
    %c0_179 = arith.constant 0 : index
    %c8_180 = arith.constant 8 : index
    %435 = vector.load %arg3[%c0_178, %c0_179, %c8_180] : memref<1x8x10xf32, #tpu.memory_space<vmem>>, vector<1x8x1xf32>
    %436 = vector.shape_cast %435 : vector<1x8x1xf32> to vector<8x1xf32>
    %437 = vector.broadcast %436 : vector<8x1xf32> to vector<8x128xf32>
    %438 = arith.mulf %434, %437 : vector<8x128xf32>
    %439 = arith.addf %415, %438 : vector<8x128xf32>
    %c0_181 = arith.constant 0 : index
    %c0_182 = arith.constant 0 : index
    %c18 = arith.constant 18 : index
    %440 = vector.load %arg4[%c0_181, %c0_182, %c18] : memref<1x8x26xf32, #tpu.memory_space<vmem>>, vector<1x8x1xf32>
    %441 = vector.shape_cast %440 : vector<1x8x1xf32> to vector<8x1xf32>
    %442 = vector.broadcast %441 : vector<8x1xf32> to vector<8x128xf32>
    %443 = arith.mulf %434, %442 : vector<8x128xf32>
    %444 = arith.addf %420, %443 : vector<8x128xf32>
    %c126_i32_183 = arith.constant 126 : i32
    %445 = tpu.dynamic_rotate %367 by %c126_i32_183 dim 1 : vector<8x128xf32>, i32 -> vector<8x128xf32>
    %c2_i32_184 = arith.constant 2 : i32
    %446 = vector.broadcast %c2_i32_184 : i32 to vector<1x128xi32>
    %447 = arith.addi %19, %446 : vector<1x128xi32>
    %c0_i32_185 = arith.constant 0 : i32
    %448 = vector.broadcast %c0_i32_185 : i32 to vector<1x128xi32>
    %449 = arith.cmpi sge, %447, %448 : vector<1x128xi32>
    %c2_i32_186 = arith.constant 2 : i32
    %450 = vector.broadcast %c2_i32_186 : i32 to vector<1x128xi32>
    %451 = arith.addi %19, %450 : vector<1x128xi32>
    %c16_i32_187 = arith.constant 16 : i32
    %452 = vector.broadcast %c16_i32_187 : i32 to vector<1x128xi32>
    %453 = arith.cmpi slt, %451, %452 : vector<1x128xi32>
    %454 = arith.andi %449, %453 : vector<1x128xi1>
    %cst_188 = arith.constant 0.000000e+00 : f32
    %455 = vector.shape_cast %454 : vector<1x128xi1> to vector<1x128xi1>
    %456 = vector.broadcast %455 : vector<1x128xi1> to vector<8x128xi1>
    %457 = vector.broadcast %cst_188 : f32 to vector<8x128xf32>
    %458 = arith.select %456, %445, %457 : vector<8x128xi1>, vector<8x128xf32>
    %c0_189 = arith.constant 0 : index
    %c0_190 = arith.constant 0 : index
    %c19 = arith.constant 19 : index
    %459 = vector.load %arg4[%c0_189, %c0_190, %c19] : memref<1x8x26xf32, #tpu.memory_space<vmem>>, vector<1x8x1xf32>
    %460 = vector.shape_cast %459 : vector<1x8x1xf32> to vector<8x1xf32>
    %461 = vector.broadcast %460 : vector<8x1xf32> to vector<8x128xf32>
    %462 = arith.mulf %458, %461 : vector<8x128xf32>
    %463 = arith.addf %444, %462 : vector<8x128xf32>
    %c96_i32 = arith.constant 96 : i32
    %464 = tpu.dynamic_rotate %1 by %c96_i32 dim 1 : vector<8x128xf32>, i32 -> vector<8x128xf32>
    %c96_i32_191 = arith.constant 96 : i32
    %465 = tpu.dynamic_rotate %62 by %c96_i32_191 dim 1 : vector<8x128xf32>, i32 -> vector<8x128xf32>
    %c96_i32_192 = arith.constant 96 : i32
    %466 = vector.broadcast %c96_i32_192 : i32 to vector<1x128xi32>
    %467 = arith.cmpi slt, %3, %466 : vector<1x128xi32>
    %468 = vector.shape_cast %467 : vector<1x128xi1> to vector<1x128xi1>
    %469 = vector.broadcast %468 : vector<1x128xi1> to vector<8x128xi1>
    %470 = arith.select %469, %464, %465 : vector<8x128xi1>, vector<8x128xf32>
    %c2_i32_193 = arith.constant 2 : i32
    %471 = tpu.dynamic_rotate %470 by %c2_i32_193 dim 1 : vector<8x128xf32>, i32 -> vector<8x128xf32>
    %c-2_i32_194 = arith.constant -2 : i32
    %472 = vector.broadcast %c-2_i32_194 : i32 to vector<1x128xi32>
    %473 = arith.addi %19, %472 : vector<1x128xi32>
    %c0_i32_195 = arith.constant 0 : i32
    %474 = vector.broadcast %c0_i32_195 : i32 to vector<1x128xi32>
    %475 = arith.cmpi sge, %473, %474 : vector<1x128xi32>
    %c-2_i32_196 = arith.constant -2 : i32
    %476 = vector.broadcast %c-2_i32_196 : i32 to vector<1x128xi32>
    %477 = arith.addi %19, %476 : vector<1x128xi32>
    %c16_i32_197 = arith.constant 16 : i32
    %478 = vector.broadcast %c16_i32_197 : i32 to vector<1x128xi32>
    %479 = arith.cmpi slt, %477, %478 : vector<1x128xi32>
    %480 = arith.andi %475, %479 : vector<1x128xi1>
    %cst_198 = arith.constant 0.000000e+00 : f32
    %481 = vector.shape_cast %480 : vector<1x128xi1> to vector<1x128xi1>
    %482 = vector.broadcast %481 : vector<1x128xi1> to vector<8x128xi1>
    %483 = vector.broadcast %cst_198 : f32 to vector<8x128xf32>
    %484 = arith.select %482, %471, %483 : vector<8x128xi1>, vector<8x128xf32>
    %c0_199 = arith.constant 0 : index
    %c0_200 = arith.constant 0 : index
    %c20 = arith.constant 20 : index
    %485 = vector.load %arg4[%c0_199, %c0_200, %c20] : memref<1x8x26xf32, #tpu.memory_space<vmem>>, vector<1x8x1xf32>
    %486 = vector.shape_cast %485 : vector<1x8x1xf32> to vector<8x1xf32>
    %487 = vector.broadcast %486 : vector<8x1xf32> to vector<8x128xf32>
    %488 = arith.mulf %484, %487 : vector<8x128xf32>
    %489 = arith.addf %463, %488 : vector<8x128xf32>
    %c1_i32_201 = arith.constant 1 : i32
    %490 = tpu.dynamic_rotate %470 by %c1_i32_201 dim 1 : vector<8x128xf32>, i32 -> vector<8x128xf32>
    %c-1_i32_202 = arith.constant -1 : i32
    %491 = vector.broadcast %c-1_i32_202 : i32 to vector<1x128xi32>
    %492 = arith.addi %19, %491 : vector<1x128xi32>
    %c0_i32_203 = arith.constant 0 : i32
    %493 = vector.broadcast %c0_i32_203 : i32 to vector<1x128xi32>
    %494 = arith.cmpi sge, %492, %493 : vector<1x128xi32>
    %c-1_i32_204 = arith.constant -1 : i32
    %495 = vector.broadcast %c-1_i32_204 : i32 to vector<1x128xi32>
    %496 = arith.addi %19, %495 : vector<1x128xi32>
    %c16_i32_205 = arith.constant 16 : i32
    %497 = vector.broadcast %c16_i32_205 : i32 to vector<1x128xi32>
    %498 = arith.cmpi slt, %496, %497 : vector<1x128xi32>
    %499 = arith.andi %494, %498 : vector<1x128xi1>
    %cst_206 = arith.constant 0.000000e+00 : f32
    %500 = vector.shape_cast %499 : vector<1x128xi1> to vector<1x128xi1>
    %501 = vector.broadcast %500 : vector<1x128xi1> to vector<8x128xi1>
    %502 = vector.broadcast %cst_206 : f32 to vector<8x128xf32>
    %503 = arith.select %501, %490, %502 : vector<8x128xi1>, vector<8x128xf32>
    %c0_207 = arith.constant 0 : index
    %c0_208 = arith.constant 0 : index
    %c21 = arith.constant 21 : index
    %504 = vector.load %arg4[%c0_207, %c0_208, %c21] : memref<1x8x26xf32, #tpu.memory_space<vmem>>, vector<1x8x1xf32>
    %505 = vector.shape_cast %504 : vector<1x8x1xf32> to vector<8x1xf32>
    %506 = vector.broadcast %505 : vector<8x1xf32> to vector<8x128xf32>
    %507 = arith.mulf %503, %506 : vector<8x128xf32>
    %508 = arith.addf %489, %507 : vector<8x128xf32>
    %c0_209 = arith.constant 0 : index
    %c0_210 = arith.constant 0 : index
    %c22 = arith.constant 22 : index
    %509 = vector.load %arg4[%c0_209, %c0_210, %c22] : memref<1x8x26xf32, #tpu.memory_space<vmem>>, vector<1x8x1xf32>
    %510 = vector.shape_cast %509 : vector<1x8x1xf32> to vector<8x1xf32>
    %511 = vector.broadcast %510 : vector<8x1xf32> to vector<8x128xf32>
    %512 = arith.mulf %470, %511 : vector<8x128xf32>
    %513 = arith.addf %508, %512 : vector<8x128xf32>
    %c127_i32_211 = arith.constant 127 : i32
    %514 = tpu.dynamic_rotate %470 by %c127_i32_211 dim 1 : vector<8x128xf32>, i32 -> vector<8x128xf32>
    %c1_i32_212 = arith.constant 1 : i32
    %515 = vector.broadcast %c1_i32_212 : i32 to vector<1x128xi32>
    %516 = arith.addi %19, %515 : vector<1x128xi32>
    %c0_i32_213 = arith.constant 0 : i32
    %517 = vector.broadcast %c0_i32_213 : i32 to vector<1x128xi32>
    %518 = arith.cmpi sge, %516, %517 : vector<1x128xi32>
    %c1_i32_214 = arith.constant 1 : i32
    %519 = vector.broadcast %c1_i32_214 : i32 to vector<1x128xi32>
    %520 = arith.addi %19, %519 : vector<1x128xi32>
    %c16_i32_215 = arith.constant 16 : i32
    %521 = vector.broadcast %c16_i32_215 : i32 to vector<1x128xi32>
    %522 = arith.cmpi slt, %520, %521 : vector<1x128xi32>
    %523 = arith.andi %518, %522 : vector<1x128xi1>
    %cst_216 = arith.constant 0.000000e+00 : f32
    %524 = vector.shape_cast %523 : vector<1x128xi1> to vector<1x128xi1>
    %525 = vector.broadcast %524 : vector<1x128xi1> to vector<8x128xi1>
    %526 = vector.broadcast %cst_216 : f32 to vector<8x128xf32>
    %527 = arith.select %525, %514, %526 : vector<8x128xi1>, vector<8x128xf32>
    %c0_217 = arith.constant 0 : index
    %c0_218 = arith.constant 0 : index
    %c23 = arith.constant 23 : index
    %528 = vector.load %arg4[%c0_217, %c0_218, %c23] : memref<1x8x26xf32, #tpu.memory_space<vmem>>, vector<1x8x1xf32>
    %529 = vector.shape_cast %528 : vector<1x8x1xf32> to vector<8x1xf32>
    %530 = vector.broadcast %529 : vector<8x1xf32> to vector<8x128xf32>
    %531 = arith.mulf %527, %530 : vector<8x128xf32>
    %532 = arith.addf %513, %531 : vector<8x128xf32>
    %c126_i32_219 = arith.constant 126 : i32
    %533 = tpu.dynamic_rotate %470 by %c126_i32_219 dim 1 : vector<8x128xf32>, i32 -> vector<8x128xf32>
    %c2_i32_220 = arith.constant 2 : i32
    %534 = vector.broadcast %c2_i32_220 : i32 to vector<1x128xi32>
    %535 = arith.addi %19, %534 : vector<1x128xi32>
    %c0_i32_221 = arith.constant 0 : i32
    %536 = vector.broadcast %c0_i32_221 : i32 to vector<1x128xi32>
    %537 = arith.cmpi sge, %535, %536 : vector<1x128xi32>
    %c2_i32_222 = arith.constant 2 : i32
    %538 = vector.broadcast %c2_i32_222 : i32 to vector<1x128xi32>
    %539 = arith.addi %19, %538 : vector<1x128xi32>
    %c16_i32_223 = arith.constant 16 : i32
    %540 = vector.broadcast %c16_i32_223 : i32 to vector<1x128xi32>
    %541 = arith.cmpi slt, %539, %540 : vector<1x128xi32>
    %542 = arith.andi %537, %541 : vector<1x128xi1>
    %cst_224 = arith.constant 0.000000e+00 : f32
    %543 = vector.shape_cast %542 : vector<1x128xi1> to vector<1x128xi1>
    %544 = vector.broadcast %543 : vector<1x128xi1> to vector<8x128xi1>
    %545 = vector.broadcast %cst_224 : f32 to vector<8x128xf32>
    %546 = arith.select %544, %533, %545 : vector<8x128xi1>, vector<8x128xf32>
    %c0_225 = arith.constant 0 : index
    %c0_226 = arith.constant 0 : index
    %c24 = arith.constant 24 : index
    %547 = vector.load %arg4[%c0_225, %c0_226, %c24] : memref<1x8x26xf32, #tpu.memory_space<vmem>>, vector<1x8x1xf32>
    %548 = vector.shape_cast %547 : vector<1x8x1xf32> to vector<8x1xf32>
    %549 = vector.broadcast %548 : vector<8x1xf32> to vector<8x128xf32>
    %550 = arith.mulf %546, %549 : vector<8x128xf32>
    %551 = arith.addf %532, %550 : vector<8x128xf32>
    %c0_227 = arith.constant 0 : index
    %c0_228 = arith.constant 0 : index
    %c1_229 = arith.constant 1 : index
    %552 = vector.load %arg2[%c0_227, %c0_228, %c1_229] : memref<1x8x2xf32, #tpu.memory_space<vmem>>, vector<1x8x1xf32>
    %553 = vector.shape_cast %552 : vector<1x8x1xf32> to vector<8x1xf32>
    %554 = vector.broadcast %553 : vector<8x1xf32> to vector<8x128xf32>
    %555 = arith.addf %307, %554 : vector<8x128xf32>
    %cst_230 = arith.constant 0.000000e+00 : f32
    %556 = vector.broadcast %cst_230 : f32 to vector<8x128xf32>
    %557 = arith.maximumf %555, %556 : vector<8x128xf32>
    %c0_231 = arith.constant 0 : index
    %c0_232 = arith.constant 0 : index
    %c0_233 = arith.constant 0 : index
    %558 = vector.load %arg5[%c0_231, %c0_232, %c0_233] : memref<1x8x128xf32, #tpu.memory_space<vmem>>, vector<1x8x128xf32>
    %559 = vector.shape_cast %558 : vector<1x8x128xf32> to vector<8x128xf32>
    %560 = vector.shape_cast %557 : vector<8x128xf32> to vector<1x8x128xf32>
    tpu.vector_store %arg5[%c0_231, %c0_232, %c0_233], %560 {strides = array<i32>} : memref<1x8x128xf32, #tpu.memory_space<vmem>>, vector<1x8x128xf32>,
    %c0_234 = arith.constant 0 : index
    %c0_235 = arith.constant 0 : index
    %c9_236 = arith.constant 9 : index
    %561 = vector.load %arg3[%c0_234, %c0_235, %c9_236] : memref<1x8x10xf32, #tpu.memory_space<vmem>>, vector<1x8x1xf32>
    %562 = vector.shape_cast %561 : vector<1x8x1xf32> to vector<8x1xf32>
    %563 = vector.broadcast %562 : vector<8x1xf32> to vector<8x128xf32>
    %564 = arith.addf %439, %563 : vector<8x128xf32>
    %cst_237 = arith.constant 0.000000e+00 : f32
    %565 = vector.broadcast %cst_237 : f32 to vector<8x128xf32>
    %566 = arith.maximumf %564, %565 : vector<8x128xf32>
    %c0_238 = arith.constant 0 : index
    %c0_239 = arith.constant 0 : index
    %c0_240 = arith.constant 0 : index
    %567 = vector.load %arg6[%c0_238, %c0_239, %c0_240] : memref<1x8x128xf32, #tpu.memory_space<vmem>>, vector<1x8x128xf32>
    %568 = vector.shape_cast %567 : vector<1x8x128xf32> to vector<8x128xf32>
    %569 = vector.shape_cast %566 : vector<8x128xf32> to vector<1x8x128xf32>
    tpu.vector_store %arg6[%c0_238, %c0_239, %c0_240], %569 {strides = array<i32>} : memref<1x8x128xf32, #tpu.memory_space<vmem>>, vector<1x8x128xf32>,
    %c0_241 = arith.constant 0 : index
    %c0_242 = arith.constant 0 : index
    %c25 = arith.constant 25 : index
    %570 = vector.load %arg4[%c0_241, %c0_242, %c25] : memref<1x8x26xf32, #tpu.memory_space<vmem>>, vector<1x8x1xf32>
    %571 = vector.shape_cast %570 : vector<1x8x1xf32> to vector<8x1xf32>
    %572 = vector.broadcast %571 : vector<8x1xf32> to vector<8x128xf32>
    %573 = arith.addf %551, %572 : vector<8x128xf32>
    %cst_243 = arith.constant 0.000000e+00 : f32
    %574 = vector.broadcast %cst_243 : f32 to vector<8x128xf32>
    %575 = arith.maximumf %573, %574 : vector<8x128xf32>
    %c0_244 = arith.constant 0 : index
    %c0_245 = arith.constant 0 : index
    %c0_246 = arith.constant 0 : index
    %576 = vector.load %arg7[%c0_244, %c0_245, %c0_246] : memref<1x8x128xf32, #tpu.memory_space<vmem>>, vector<1x8x128xf32>
    %577 = vector.shape_cast %576 : vector<1x8x128xf32> to vector<8x128xf32>
    %578 = vector.shape_cast %575 : vector<8x128xf32> to vector<1x8x128xf32>
    tpu.vector_store %arg7[%c0_244, %c0_245, %c0_246], %578 {strides = array<i32>} : memref<1x8x128xf32, #tpu.memory_space<vmem>>, vector<1x8x128xf32>,
    return
  }
  func.func @transform_0(%arg0: i32) -> (i32, i32, i32) {
    %c0_i32 = arith.constant 0 : i32
    %c0_i32_0 = arith.constant 0 : i32
    %c0_i32_1 = arith.constant 0 : i32
    return %arg0, %c0_i32, %c0_i32_0 : i32, i32, i32
  }
  func.func @transform_1(%arg0: i32) -> (i32, i32, i32) {
    %c0_i32 = arith.constant 0 : i32
    %c0_i32_0 = arith.constant 0 : i32
    %c0_i32_1 = arith.constant 0 : i32
    return %arg0, %c0_i32, %c0_i32_0 : i32, i32, i32
  }
  func.func @transform_2(%arg0: i32) -> (i32, i32, i32) {
    %c0_i32 = arith.constant 0 : i32
    %c0_i32_0 = arith.constant 0 : i32
    %c0_i32_1 = arith.constant 0 : i32
    return %arg0, %c0_i32, %c0_i32_0 : i32, i32, i32
  }
  func.func @transform_3(%arg0: i32) -> (i32, i32, i32) {
    %c0_i32 = arith.constant 0 : i32
    %c0_i32_0 = arith.constant 0 : i32
    %c0_i32_1 = arith.constant 0 : i32
    return %arg0, %c0_i32, %c0_i32_0 : i32, i32, i32
  }
  func.func @transform_4(%arg0: i32) -> (i32, i32, i32) {
    %c0_i32 = arith.constant 0 : i32
    %c0_i32_0 = arith.constant 0 : i32
    %c0_i32_1 = arith.constant 0 : i32
    return %arg0, %c0_i32, %c0_i32_0 : i32, i32, i32
  }
  func.func @transform_5(%arg0: i32) -> (i32, i32, i32) {
    %c0_i32 = arith.constant 0 : i32
    %c0_i32_0 = arith.constant 0 : i32
    %c0_i32_1 = arith.constant 0 : i32
    return %arg0, %c0_i32, %c0_i32_0 : i32, i32, i32
  }
  func.func @transform_6(%arg0: i32) -> (i32, i32, i32) {
    %c0_i32 = arith.constant 0 : i32
    %c0_i32_0 = arith.constant 0 : i32
    %c0_i32_1 = arith.constant 0 : i32
    return %arg0, %c0_i32, %c0_i32_0 : i32, i32, i32
  }
}

</mosaic_0001>

<bundles_post_ra>
// kernel: tpu_custom_call.1
= control target key start
LH: loop header
LB: loop body
LE: loop exit
PB: predicated region body
PF: predicated region fallthrough
CT: control target
= control target key end

     0   :  { %12 = vsyncpa [#allocation3], 0  ;;  %s1986_s0 = inlined_call_operand.vmem [shape: f32[2,8,128], index: 0, kind: input, shape index: {}]   ;;  %s1987_s1 = inlined_call_operand.vmem [shape: f32[2,8,2], index: 1, kind: input, shape index: {}]   ;;  %s1988_s2 = inlined_call_operand.hbm [shape: f32[2,8,10], index: 2, kind: input, shape index: {}]   ;;  %s1989_s3 = inlined_call_operand.hbm [shape: f32[2,8,26], index: 3, kind: input, shape index: {}]   ;;  %s1990_s4 = inlined_call_operand.hbm [shape: f32[2,8,128], index: 4, kind: output, shape index: {0}]   ;;  %s1991_s5 = inlined_call_operand.hbm [shape: f32[2,8,128], index: 5, kind: output, shape index: {1}]   ;;  %s1992_s6 = inlined_call_operand.hbm [shape: f32[2,8,128], index: 6, kind: output, shape index: {2}]  }
   0x1   :  { %14 = vsyncpa [#allocation3 + $0x1], 0 }
   0x2   :  { %15 = vsyncpa [#allocation6], 0 }
   0x3   :  { %17 = vsyncpa [#allocation6 + $0x1], 0 }
   0x4   :  { %18 = vsyncpa [#allocation4], 0 }
   0x5   :  { %20 = vsyncpa [#allocation4 + $0x1], 0 }
   0x6   :  { %21 = vsyncpa [#allocation9], 0 }
   0x7   :  { %23 = vsyncpa [#allocation9 + $0x1], 0  ;;  %s1407_s21 = smov 0   ;;  %s1409_s22 = smov 0  }
   0x8   :  { %s1411_s23 = smov 0   ;;  %s1413_s24 = smov 0  }
   0x9 LB: > { %s1428_s25 = sadd.s32 4294967295, %s1330_s24   ;;  %s1993_s26 = sadd.s32 4294967294, %s1330_s24   ;;  %s1330_s24 = sphi %s1413_s24, %s2016_s24   ;;  %s1326_s23 = sphi %s1411_s23, %s2015_s23   ;;  %s1322_s22 = sphi %s1409_s22, %s2014_s22   ;;  %s1318_s21 = sphi %s1407_s21, %s2013_s21  }
   0xa   : > { %s1432_s27 = sadd.s32 1, %s1330_s24   ;;  %s88_s28 = sadd.s32 1, %s1326_s23 }
   0xb   : > { %s85_s29 = ssub.s32 %s1330_s24, %s1432_s27  ;;  %p95_p0 = scmp.ne.s32.totalorder %s1326_s23, %s1322_s22 }
   0xc   : > { %p86_p1 = scmp.eq.s32.totalorder %s85_s29, 0  ;;  %p96_p2 = scmp.eq.s32.totalorder %s1330_s24, 0 }
   0xd   : > { %p101_p3 = scmp.ne.s32.totalorder %s1322_s22, %s1318_s21  ;;  %p102_p4 = scmp.eq.s32.totalorder %s1428_s25, 0 }
   0xe   : > { %s1444_s30 = scalar_select %p86_p1, %s1326_s23, %s88_s28  }
   0xf   : > { %p1446_p5 = por %p96_p2, %p95_p0  ;;  %p1450_p6 = por %p102_p4, %p101_p3 }
  0x10   : > { %p151_p7 = scmp.eq.s32.totalorder %s1428_s25, 1  ;;  %p157_p8 = scmp.eq.s32.totalorder %s1993_s26, 1 }
  0x11   : > { %s1998_s8 = scalar_select %p1450_p6, 1, 0 }
  0x12   : > { %p1032_p10 = scmp.lt.s32.totalorder %s1330_s24, 2  ;;  %p1459_p11 = por %p151_p7, %p95_p0 }
  0x13   : > { %p1463_p12 = por %p157_p8, %p101_p3  ;;  %s1468_s11 = sand.u32 1, %s1326_s23  }
  0x14   : > { %s1999_s9 = scalar_select %p1459_p11, 1, 0 }
  0x15   : > { %s2000_s10 = scalar_select %p1463_p12, 1, 0 }
  0x16   : > { %s984_s12 = sshll.u32 %s1330_s24, 7  ;;  %s983_s13 = sshll.u32 %s1468_s11, 3 }
  0x17   : > { %s1477_s16 = scalar_lea.hbm %s1988_s2, %s984_s12  ;;  %s247_s17 = scalar_lea.vmem [#allocation2], %s983_s13 }
  0x18   : > { %s254_s18 = sshll.u32 %s247_s17, 4  ;;  %p1483_p13 = pnand %p1032_p10, %p1446_p5  ;;  %s1487_s18 = int_to_ptr.vmem [resolvable:$true] %s254_s18 }
  0x19   : > { %s244_s20 = scalar_lea.sflag [#allocation3], %s1468_s11  ;;  %s1140_s28 = scalar_lea.hbm %s1477_s16, 128 }
  0x1a   : > { %p1141_p2 = scmp.ne.s32.totalorder %s1477_s16, %s1140_s28  ;;  %p1142_p3 = pneg %p1483_p13 }
  0x1b   : > { %s1145_s14 = scalar_lea.hbm %s1988_s2, 256  ;;  %p1146_p5 = scmp.lt.u32.totalorder %s1477_s16, %s1988_s2 }
  0x1c   : > { %p1143_p4 = pnand %p1142_p3, %p1141_p2  ;;  %p1147_p8 = scmp.lt.u32.totalorder %s1145_s14, %s1140_s28 }
  0x1d   : > { %p1149_p9 = scmp.lt.u32.totalorder %s1140_s28, %s1477_s16 }
  0x1e   : > { %p1144_p7 = pneg %p1143_p4  ;;  %p1148_p10 = por %p1147_p8, %p1146_p5 }
  0x20   : > { %p1150_p0 = por %p1149_p9, %p1148_p10 }
  0x22   : > { %p1151_p1 = pnand %p1150_p0, %p1144_p7 }
  0x24   : > { %1154 = shalt.err (!%p1151_p1)
}
  0x25   : > { %s1155_s26 = scalar_lea.vmem %s1487_s18, 128  ;;  %s1332_s29 = smov [#allocation2]  }
  0x26   : > { %p1156_p2 = scmp.ne.s32.totalorder %s1487_s18, %s1155_s26  ;;  %s1160_s7 = sshll.u32 %s1332_s29, 4  ;;  %s1161_s7 = int_to_ptr.vmem [resolvable:$false] %s1160_s7 }
  0x27   : > { %s1162_s15 = scalar_lea.vmem %s1161_s7, 256  ;;  %p1163_p11 = scmp.lt.s32.totalorder %s1487_s18, %s1161_s7 }
  0x28   : > { %p1158_p4 = pnand %p1156_p2, %p1142_p3  ;;  %p1164_p5 = scmp.lt.s32.totalorder %s1162_s15, %s1155_s26 }
  0x2a   : > { %p1159_p12 = pneg %p1158_p4  ;;  %p1165_p8 = por %p1164_p5, %p1163_p11 }
  0x2c   : > { %p1166_p9 = pnand %p1165_p8, %p1159_p12 }
  0x2e   : > { %1169 = shalt.err (!%p1166_p9)
}
  0x2f   : > { %1018 = dma.hbm_to_vmem [thread:$0]  (!%p1483_p13), %s1477_s16, 128, %s1487_s18, %s244_s20  }
  0x30   : > { %p2002_p0 = scmp.lt.s32.totalorder %s1330_s24, 3  ;;  %p2003_p1 = scmp.ge.s32.totalorder %s1330_s24, 1 }
  0x31   : > { %s1530_s17 = scalar_lea.hbm %s1989_s3, %s984_s12  ;;  %s265_s29 = scalar_lea.vmem [#allocation5], %s983_s13 }
  0x32   : > { %p1521_p7 = pnand %p2003_p1, %p2002_p0  ;;  %s272_s7 = sshll.u32 %s265_s29, 4  ;;  %s273_s7 = int_to_ptr.vmem [resolvable:$true] %s272_s7 }
  0x33   : > { %s262_s16 = scalar_lea.sflag [#allocation6], %s1468_s11  ;;  %s1170_s18 = scalar_lea.hbm %s1530_s17, 128 }
  0x34   : > { %s2004_s28 = scalar_select %p1521_p7, 1, 0 }
  0x35   : > { %p1171_p11 = scmp.ne.s32.totalorder %s1530_s17, %s1170_s18  ;;  %s1175_s12 = scalar_lea.hbm %s1989_s3, 256 }
  0x36   : > { %p1176_p2 = scmp.lt.u32.totalorder %s1530_s17, %s1989_s3  ;;  %p1177_p4 = scmp.lt.u32.totalorder %s1175_s12, %s1170_s18 }
  0x37   : > { %p1173_p12 = pnand %p1171_p11, %p1142_p3  ;;  %p1179_p8 = scmp.lt.u32.totalorder %s1170_s18, %s1530_s17 }
  0x38   : > { %p1178_p5 = por %p1177_p4, %p1176_p2 }
  0x39   : > { %p1174_p10 = pneg %p1173_p12 }
  0x3a   : > { %p1180_p9 = por %p1179_p8, %p1178_p5 }
  0x3c   : > { %p1181_p0 = pnand %p1180_p9, %p1174_p10 }
  0x3e   : > { %1184 = shalt.err (!%p1181_p0)
}
  0x3f   : > { %s1185_s11 = scalar_lea.vmem %s273_s7, 128  ;;  %s1333_s13 = smov [#allocation5]  }
  0x40   : > { %p1186_p1 = scmp.ne.s32.totalorder %s273_s7, %s1185_s11  ;;  %s1190_s29 = sshll.u32 %s1333_s13, 4  ;;  %s1191_s29 = int_to_ptr.vmem [resolvable:$false] %s1190_s29 }
  0x41   : > { %s1192_s20 = scalar_lea.vmem %s1191_s29, 256  ;;  %p1193_p6 = scmp.lt.s32.totalorder %s273_s7, %s1191_s29 }
  0x42   : > { %p1188_p11 = pnand %p1186_p1, %p1142_p3  ;;  %p1194_p7 = scmp.lt.s32.totalorder %s1192_s20, %s1185_s11 }
  0x44   : > { %p1189_p12 = pneg %p1188_p11  ;;  %p1195_p2 = por %p1194_p7, %p1193_p6 }
  0x46   : > { %p1196_p4 = pnand %p1195_p2, %p1189_p12 }
  0x48   : > { %1199 = shalt.err (!%p1196_p4)
}
  0x49   : > { %1021 = dma.hbm_to_vmem [thread:$0]  (!%p1483_p13), %s1530_s17, 128, %s273_s7, %s262_s16  }
  0x4a   : > { %p2005_p10 = scmp.ne.s32.totalorder %s2004_s28, 0 }
  0x4b   : > { %s1557_s18 = sand.u32 (!%p2005_p10), 1, %s1322_s22   ;;  %p2006_p6 = scmp.ne.s32.totalorder (!%p2005_p10), %s1998_s8, 0 }
  0x4c   : > { %281 = sbr.rel (%p2005_p10) target bundleno = 487 (0x1e7), region = 36  ;;  %s1560_s15 = sshll.u32 (!%p2005_p10), %s1557_s18, 3 }
  0x4d   : > { %s284_s12 = scalar_lea.sflag (!%p2005_p10), [#allocation3], %s1557_s18  ;;  %s287_s26 = scalar_lea.vmem (!%p2005_p10), [#allocation2], %s1560_s15 }
  0x53   : > { %1301 = dma.done.wait (%p2006_p6), %s284_s12, 128  }
  0x54   : > { %1303 = vsyncadd (%p2006_p6), %s284_s12, 4294967168  ;;  %s293_s19 = scalar_lea.sflag [#allocation6], %s1557_s18  ;;  %s296_s28 = scalar_lea.vmem [#allocation5], %s1560_s15 }
  0x55   : > { %1305 = dma.done.wait (%p2006_p6), %s293_s19, 128  }
  0x56   : > { %1307 = vsyncadd (%p2006_p6), %s293_s19, 4294967168  ;;  %p348_p13 = scmp.lt.s32.totalorder %s1428_s25, 1  ;;  %v357_v0 = vlaneseq  ;;  %v1334_v1 = vmov 0   ;;  %v1335_v2 = vmov 2   ;;  %v1586_v5 = vld [vmem:[%s296_s28] sm:$0xff]  ;;  %s1336_s11 = smov 32  }
  0x57   : > { %1101 = vset.pattern.permute.xlu1 %v1334_v1  ;;  %1103 = vset.pattern.permute.xlu0 %v1335_v2  ;;  %v1337_v8 = vmov 0.0   ;;  %v1338_v10 = vmov 1   ;;  %v1339_v12 = vmov 3   ;;  %v1340_v13 = vmov 6   ;;  %s1341_s13 = smov 16   ;;  %s1344_s29 = smov 112  }
  0x58   : > { %s1577_s17 = scalar_select %p348_p13, %s1428_s25, 1  ;;  %v358_v3 = vshrl.u32 %v357_v0, 7  ;;  %415 = vperm.xlu1 %1101, %v1586_v5   ;;  %v1342_v14 = vmov 4   ;;  %v1343_v15 = vmov 5   ;;  %v1345_v16 = vmov 8   ;;  %v1611_v17 = vld [vmem:[%s287_s26] sm:$0xff] }
  0x59   : > { %s1346_s20 = smov 2   ;;  %v1347_v18 = vmov 11   ;;  %s1348_s12 = smov 1   ;;  %v1349_v19 = vmov 7   ;;  %v1350_v22 = vmov 12   ;;  %v1351_v24 = vmov 15  }
  0x5a   : > { %s993_s7 = sshll.u32 %s1577_s17, 3  ;;  %v377_v4 = vand.u32 1, %v358_v3  ;;  %v1352_v25 = vmov 9   ;;  %s1353_s26 = smov 126   ;;  %v1355_v26 = vmov 20   ;;  %v1356_v27 = vmov 21  }
  0x5b   : > { %s351_s14 = scalar_lea.vmem %s1986_s0, %s993_s7  ;;  %s1354_s19 = smov 96   ;;  %v1357_v28 = vmov 10   ;;  %v1358_v29 = vmov 22   ;;  %v1359_v31 = vmov 13   ;;  %v1360_v32 = vmov 14  }
  0x5c   : > { %v1588_v6 = vld [vmem:[%s351_s14] sm:$0xff]  ;;  %vm388_vm0 = vcmp.ne.s32.totalorder %v377_v4, 0  ;;  %1102 = vset.pattern.permute.xlu1 %v1338_v10  ;;  %vm385_vm1 = vcmp.ne.s32.totalorder %v377_v4, 1  ;;  %s355_s16 = scalar_lea.vmem %s1987_s1, %s993_s7  ;;  %s1361_s17 = smov 127   ;;  %v1362_v33 = vmov 16   ;;  %v1363_v34 = vmov 17  }
  0x5d   : > { %395 = vrot.lane.b32.xlu0 %v1588_v6, %s1336_s11  ;;  %v393_v7 = vrot.slane %v1588_v6, 7  ;;  %v996_v9 = vsel %vm388_vm0, 1.0, %v1337_v8  ;;  %430 = vperm.xlu1 %1102, %v1586_v5   ;;  %v391_v20 = vrot.slane %v1588_v6, 1  ;;  %v995_v21 = vsel %vm385_vm1, 1.0, %v1337_v8  ;;  %v1644_v30 = vld [vmem:[%s355_s16] sm:$0xff]  ;;  %s1853_s7 = sshll.u32 %s1428_s25, 7 }
  0x5e   : > { %v1364_v35 = vmov 18   ;;  %v1365_v36 = vmov 19   ;;  %v1664_v39 = vand.u32 127, %v357_v0  ;;  %v1366_v49 = vmov 23   ;;  %s333_s14 = scalar_lea.vmem [#allocation7], %s1560_s15  ;;  %s1877_s16 = scalar_lea.hbm %s1991_s5, %s1853_s7 }
  0x5f   : > { %v394_v11 = vmul.f32 %v996_v9, %v393_v7  ;;  %v392_v23 = vmul.f32 %v995_v21, %v391_v20  ;;  %v1368_v7 = vmov 25   ;;  %p2007_p7 = scmp.ne.s32.totalorder %s1999_s9, 0 }
  0x60   : > { %vm399_vm2 = vcmp.ge.s32.totalorder %v1664_v39, 32  ;;  %vm475_vm3 = vcmp.ge.s32.totalorder %v1664_v39, 16  ;;  %vm613_vm4 = vcmp.lt.s32.totalorder %v1664_v39, 112  ;;  %vm681_vm5 = vcmp.lt.s32.totalorder %v1664_v39, 96 }
  0x61   : > { %436 = vperm.xlu0 %1103, %v1586_v5   ;;  %1104 = vset.pattern.permute.xlu1 %v1339_v12 }
  0x62   : > { %451 = vperm.xlu1 %1104, %v1586_v5  }
  0x65   : > { %397 = vrot.lane.b32.xlu0 %v394_v11, %s1336_s11  ;;  %s776_s11 = sshll.u32 %s333_s14, 4  ;;  %s1871_s11 = int_to_ptr.vmem [resolvable:$true] %s776_s11 }
  0x66   : > { %1108 = vset.pattern.permute.xlu0 %v1340_v13  ;;  %1105 = vset.pattern.permute.xlu1 %v1342_v14 }
  0x67   : > { %466 = vperm.xlu1 %1105, %v1586_v5  }
  0x69   : > { %471 = vrot.lane.b32.xlu0 %v1588_v6, %s1341_s13 }
  0x6b   : > { %473 = vrot.lane.b32.xlu1 %v394_v11, %s1341_s13 }
  0x6c   : > { %1106 = vset.pattern.permute.xlu1 %v1343_v15 }
  0x6d   : > { %500 = vperm.xlu0 %1108, %v1586_v5  }
  0x6f   : > { %483 = vperm.xlu1 %1106, %v1586_v5  }
  0x71   : > { %609 = vrot.lane.b32.xlu0 %v1588_v6, %s1344_s29 }
  0x72   : > { %1112 = vset.pattern.permute.xlu0 %v1345_v16 }
  0x73   : > { %1107 = vset.pattern.permute.xlu1 %v1334_v1 }
  0x74   : > { %494 = vperm.xlu1 %1107, %v1611_v17  }
  0x75   : > { %527 = vperm.xlu0 %1112, %v1586_v5  }
  0x78   : > { %1109 = vset.pattern.permute.xlu1 %v1338_v10 }
  0x79   : > { %541 = vrot.lane.b32.xlu0 %v1588_v6, %s1346_s20  ;;  %506 = vperm.xlu1 %1109, %v1611_v17  }
  0x7a   : > { %1116 = vset.pattern.permute.xlu0 %v1347_v18 }
  0x7d   : > { %550 = vrot.lane.b32.xlu0 %v1588_v6, %s1348_s12  ;;  %1110 = vset.pattern.permute.xlu1 %v1349_v19 }
  0x7e   : > { %512 = vperm.xlu1 %1110, %v1586_v5  }
  0x81   : > { %560 = vperm.xlu0 %1116, %v1586_v5  }
  0x82   : > { %1111 = vset.pattern.permute.xlu1 %v1335_v2  ;;  %v1367_v2 = vmov 24  }
  0x83   : > { %521 = vperm.xlu1 %1111, %v1611_v17  }
  0x85   : > { %1119 = vset.pattern.permute.xlu0 %v1350_v22 }
  0x86   : > { %580 = vperm.xlu0 %1119, %v1586_v5  }
  0x87   : > { %611 = vrot.lane.b32.xlu1 %v392_v23, %s1344_s29  ;;  %s1996_s29 = scalar_lea.vmem [#allocation8], %s1560_s15 }
  0x88   : > { %1113 = vset.pattern.permute.xlu1 %v1352_v25 }
  0x8a   : > { %1122 = vset.pattern.permute.xlu0 %v1351_v24  ;;  %v365_v24 = vand.u32 15, %v1664_v39 }
  0x8b   : > { %621 = vperm.xlu0 %1122, %v1586_v5   ;;  %677 = vrot.lane.b32.xlu1 %v1588_v6, %s1354_s19 }
  0x8f   : > { %600 = vrot.lane.b32.xlu0 %v1588_v6, %s1353_s26  ;;  %679 = vrot.lane.b32.xlu1 %v392_v23, %s1354_s19  ;;  %s1869_s19 = scalar_lea.hbm %s1990_s4, %s1853_s7 }
  0x90   : > { %1127 = vset.pattern.permute.xlu0 %v1355_v26 }
  0x93   : > { %689 = vperm.xlu0 %1127, %v1586_v5   ;;  %536 = vperm.xlu1 %1113, %v1586_v5  }
  0x97   : > { %1129 = vset.pattern.permute.xlu0 %v1356_v27  ;;  %1114 = vset.pattern.permute.xlu1 %v1357_v28  ;;  %v1770_v27 = vadd.s32 4294967294, %v365_v24  ;;  %v1772_v28 = vadd.s32 4294967295, %v365_v24 }
  0x98   : > { %698 = vperm.xlu0 %1129, %v1586_v5   ;;  %545 = vperm.xlu1 %1114, %v1586_v5  }
  0x99   : > { %vm406_vm6 = vcmp.ge.s32.totalorder %v1770_v27, 0  ;;  %vm423_vm7 = vcmp.ge.s32.totalorder %v1772_v28, 0 }
  0x9c   : > { %1131 = vset.pattern.permute.xlu0 %v1358_v29  ;;  %1115 = vset.pattern.permute.xlu1 %v1339_v12 }
  0x9d   : > { %554 = vperm.xlu1 %1115, %v1611_v17  }
  0xa1   : > { %1117 = vset.pattern.permute.xlu1 %v1334_v1 }
  0xa2   : > { %568 = vperm.xlu1 %1117, %v1644_v30  }
  0xa6   : > { %1118 = vset.pattern.permute.xlu1 %v1342_v14 }
  0xa7   : > { %574 = vperm.xlu1 %1118, %v1611_v17  }
  0xab   : > { %1120 = vset.pattern.permute.xlu1 %v1359_v31 }
  0xac   : > { %595 = vperm.xlu1 %1120, %v1586_v5  }
  0xb0   : > { %1121 = vset.pattern.permute.xlu1 %v1360_v32 }
  0xb1   : > { %604 = vperm.xlu1 %1121, %v1586_v5  }
  0xb5   : > { %585 = vrot.lane.b32.xlu1 %v1588_v6, %s1361_s17 }
  0xb6   : > { %1123 = vset.pattern.permute.xlu1 %v1362_v33  ;;  %v1780_v33 = vadd.s32 1, %v365_v24 }
  0xb8   : > { %vm445_vm8 = vcmp.lt.s32.totalorder %v1780_v33, 16 }
  0xb9   : > { %636 = vperm.xlu1 %1123, %v1586_v5  }
  0xbd   : > { %1124 = vset.pattern.permute.xlu1 %v1363_v34 }
  0xbe   : > { %648 = vperm.xlu1 %1124, %v1586_v5  }
  0xc2   : > { %1125 = vset.pattern.permute.xlu1 %v1364_v35 }
  0xc3   : > { %663 = vperm.xlu1 %1125, %v1586_v5  }
  0xc7   : > { %1126 = vset.pattern.permute.xlu1 %v1365_v36  ;;  %v1784_v36 = vadd.s32 2, %v365_v24 }
  0xc8   : > { %672 = vperm.xlu1 %1126, %v1586_v5  }
  0xc9   : > { %vm460_vm9 = vcmp.lt.s32.totalorder %v1784_v36, 16 }
  0xcc   : > { %1128 = vset.pattern.permute.xlu1 %v1343_v15 }
  0xcd   : > { %589 = vperm.xlu1 %1128, %v1611_v17  }
  0xcf   : > { %v396_v37 = vpop.permute.xlu0 %395 }
  0xd1   : > { %1130 = vset.pattern.permute.xlu1 %v1340_v13 }
  0xd7   : > { %v1661_v38 = vpop.permute.xlu1 %415 }
  0xdc   : > { %v1666_v41 = vpop.permute.xlu1 %430 }
  0xe0   : > { %v437_v40 = vpop.permute.xlu0 %436 }
  0xe1   : > { %v1669_v44 = vpop.permute.xlu1 %451 }
  0xe4   : > { %v398_v42 = vpop.permute.xlu0 %397 }
  0xe5   : > { %v402_v43 = vsel %vm399_vm2, %v396_v37, %v398_v42 }
  0xe6   : > { %420 = vrot.lane.b32.xlu0 %v402_v43, %s1348_s12  ;;  %403 = vrot.lane.b32.xlu1 %v402_v43, %s1346_s20  ;;  %v1673_v45 = vmul.f32 %v437_v40, %v402_v43  ;;  %v1677_v46 = vpop.permute.xlu1 %466 }
  0xe8   : > { %v472_v47 = vpop.permute.xlu0 %471 }
  0xea   : > { %704 = vperm.xlu0 %1131, %v1586_v5   ;;  %441 = vrot.lane.b32.xlu1 %v402_v43, %s1361_s17  ;;  %v474_v48 = vpop.permute.xlu1 %473 }
  0xeb   : > { %v478_v50 = vsel %vm475_vm3, %v472_v47, %v474_v48 }
  0xec   : > { %v1697_v57 = vpop.permute.xlu0 %500 }
  0xee   : > { %456 = vrot.lane.b32.xlu0 %v402_v43, %s1353_s26  ;;  %630 = vperm.xlu1 %1130, %v1611_v17   ;;  %v1684_v51 = vpop.permute.xlu1 %483 }
  0xef   : > { %1133 = vset.pattern.permute.xlu0 %v1366_v49 }
  0xf0   : > { %v610_v59 = vpop.permute.xlu0 %609 }
  0xf2   : > { %479 = vrot.lane.b32.xlu0 %v478_v50, %s1346_s20  ;;  %1132 = vset.pattern.permute.xlu1 %v1349_v19 }
  0xf3   : > { %642 = vperm.xlu1 %1132, %v1611_v17   ;;  %v1689_v52 = vpop.permute.xlu1 %494 }
  0xf4   : > { %v528_v9 = vpop.permute.xlu0 %527 }
  0xf6   : > { %488 = vrot.lane.b32.xlu0 %v478_v50, %s1348_s12 }
  0xf7   : > { %1134 = vset.pattern.permute.xlu1 %v1345_v16 }
  0xf8   : > { %v507_v53 = vpop.permute.xlu1 %506  ;;  %v542_v11 = vpop.permute.xlu0 %541 }
  0xf9   : > { %v1692_v54 = vmul.f32 %v507_v53, %v478_v50 }
  0xfa   : > { %517 = vrot.lane.b32.xlu0 %v478_v50, %s1361_s17 }
  0xfc   : > { %v551_v13 = vpop.permute.xlu0 %550 }
  0xfd   : > { %v513_v55 = vpop.permute.xlu1 %512 }
  0xfe   : > { %532 = vrot.lane.b32.xlu0 %v478_v50, %s1353_s26  ;;  %v1695_v56 = vmul.f32 %v513_v55, %v478_v50 }
 0x100   : > { %v1745_v15 = vpop.permute.xlu0 %560 }
 0x102   : > { %v1699_v58 = vpop.permute.xlu1 %521 }
 0x106   : > { %v612_v60 = vpop.permute.xlu1 %611 }
 0x107   : > { %v1702_v61 = vsel %vm613_vm4, %v610_v59, %v612_v60 }
 0x108   : > { %653 = vrot.lane.b32.xlu1 %v1702_v61, %s1361_s17  ;;  %617 = vrot.lane.b32.xlu0 %v1702_v61, %s1346_s20 }
 0x10a   : > { %v678_v62 = vpop.permute.xlu1 %677 }
 0x10c   : > { %668 = vrot.lane.b32.xlu1 %v1702_v61, %s1353_s26  ;;  %626 = vrot.lane.b32.xlu0 %v1702_v61, %s1348_s12 }
 0x10e   : > { %v680_v63 = vpop.permute.xlu1 %679 }
 0x10f   : > { %v1713_v0 = vsel %vm681_vm5, %v678_v62, %v680_v63 }
 0x110   : > { %713 = vperm.xlu0 %1133, %v1586_v5   ;;  %685 = vrot.lane.b32.xlu1 %v1713_v0, %s1346_s20  ;;  %s789_s20 = sshll.u32 %s1996_s29, 4  ;;  %s1879_s20 = int_to_ptr.vmem [resolvable:$true] %s789_s20 }
 0x112   : > { %v1718_v1 = vpop.permute.xlu1 %536 }
 0x114   : > { %1135 = vset.pattern.permute.xlu0 %v1367_v2  ;;  %657 = vperm.xlu1 %1134, %v1611_v17  }
 0x115   : > { %722 = vperm.xlu0 %1135, %v1586_v5  }
 0x117   : > { %v1722_v3 = vpop.permute.xlu1 %545 }
 0x118   : > { %694 = vrot.lane.b32.xlu1 %v1713_v0, %s1348_s12  ;;  %s1200_s12 = scalar_lea.vmem %s1871_s11, 128 }
 0x119   : > { %1137 = vset.pattern.permute.xlu0 %v1338_v10  ;;  %1136 = vset.pattern.permute.xlu1 %v1352_v25  ;;  %p1201_p3 = scmp.ne.s32.totalorder %s1871_s11, %s1200_s12 }
 0x11a   : > { %728 = vperm.xlu0 %1137, %v1644_v30  }
 0x11b   : > { %p1202_p5 = pnand %p1201_p3, %p2007_p7 }
 0x11c   : > { %737 = vperm.xlu1 %1136, %v1611_v17   ;;  %v1730_v4 = vpop.permute.xlu1 %554  ;;  %v1749_v17 = vpop.permute.xlu0 %580 }
 0x11d   : > { %p1203_p8 = pneg %p1202_p5 }
 0x11e   : > { %1139 = vset.pattern.permute.xlu0 %v1368_v7 }
 0x120   : > { %709 = vrot.lane.b32.xlu1 %v1713_v0, %s1361_s17  ;;  %s753_s17 = scalar_lea.sflag [#allocation4], %s1557_s18 }
 0x121   : > { %1138 = vset.pattern.permute.xlu1 %v1368_v7  ;;  %v1734_v8 = vpop.permute.xlu1 %568 }
 0x124   : > { %746 = vperm.xlu1 %1138, %v1586_v5   ;;  %v1753_v5 = vpop.permute.xlu0 %621 }
 0x126   : > { %v1739_v10 = vpop.permute.xlu1 %574 }
 0x128   : > { %718 = vrot.lane.b32.xlu1 %v1713_v0, %s1353_s26  ;;  %v1759_v21 = vpop.permute.xlu0 %600 }
 0x12b   : > { %v1741_v12 = vpop.permute.xlu1 %595 }
 0x12c   : > { %v1763_v23 = vpop.permute.xlu0 %689 }
 0x130   : > { %v1743_v14 = vpop.permute.xlu1 %604  ;;  %v1768_v26 = vpop.permute.xlu0 %698 }
 0x134   : > { %v1747_v16 = vpop.permute.xlu1 %585 }
 0x138   : > { %v1751_v18 = vpop.permute.xlu1 %636 }
 0x13d   : > { %v1755_v19 = vpop.permute.xlu1 %648 }
 0x142   : > { %v1757_v20 = vpop.permute.xlu1 %663 }
 0x147   : > { %v1761_v22 = vpop.permute.xlu1 %672 }
 0x14c   : > { %v1766_v25 = vpop.permute.xlu1 %589 }
 0x158   : > { %v421_v29 = vpop.permute.xlu0 %420  ;;  %v404_v30 = vpop.permute.xlu1 %403 }
 0x159   : > { %v428_v31 = vsel %vm423_vm7, %v421_v29, 0.0  ;;  %v411_v32 = vsel %vm406_vm6, %v404_v30, 0.0 }
 0x15a   : > { %v433_v34 = vmul.f32 %v1666_v41, %v428_v31  ;;  %v418_v35 = vmul.f32 %v1661_v38, %v411_v32 }
 0x15c   : > { %v442_v37 = vpop.permute.xlu1 %441  ;;  %v434_v40 = vadd.f32 %v433_v34, %v418_v35 }
 0x15d   : > { %v449_v42 = vsel %vm445_vm8, %v442_v37, 0.0 }
 0x15e   : > { %v440_v41 = vadd.f32 %v1673_v45, %v434_v40  ;;  %v454_v38 = vmul.f32 %v1669_v44, %v449_v42 }
 0x160   : > { %v455_v53 = vadd.f32 %v454_v38, %v440_v41 }
 0x169   : > { %v1786_v39 = vpop.permute.xlu0 %704 }
 0x16d   : > { %v457_v43 = vpop.permute.xlu0 %456  ;;  %v631_v35 = vpop.permute.xlu1 %630 }
 0x16e   : > { %v464_v47 = vsel %vm460_vm9, %v457_v43, 0.0  ;;  %v587_v43 = vsel %vm445_vm8, %v1747_v16, 0.0 }
 0x16f   : > { %v469_v48 = vmul.f32 %v1677_v46, %v464_v47  ;;  %v552_v46 = vsel %vm423_vm7, %v551_v13, 0.0  ;;  %v598_v38 = vmul.f32 %v1741_v12, %v587_v43  ;;  %v577_v12 = vmul.f32 %v1739_v10, %v1588_v6 }
 0x170   : > { %v557_v32 = vmul.f32 %v1730_v4, %v552_v46 }
 0x171   : > { %v480_v49 = vpop.permute.xlu0 %479  ;;  %v470_v59 = vadd.f32 %v469_v48, %v455_v53 }
 0x172   : > { %v481_v50 = vsel %vm406_vm6, %v480_v49, 0.0  ;;  %v643_v4 = vpop.permute.xlu1 %642 }
 0x173   : > { %v486_v55 = vmul.f32 %v1684_v51, %v481_v50 }
 0x175   : > { %v489_v60 = vpop.permute.xlu0 %488  ;;  %v487_v63 = vadd.f32 %v486_v55, %v470_v59 }
 0x176   : > { %v490_v62 = vsel %vm423_vm7, %v489_v60, 0.0 }
 0x177   : > { %v497_v2 = vmul.f32 %v1689_v52, %v490_v62  ;;  %v503_v45 = vmul.f32 %v1697_v57, %v490_v62  ;;  %v543_v57 = vsel %vm406_vm6, %v542_v11, 0.0  ;;  %v583_v11 = vmul.f32 %v1749_v17, %v1588_v6 }
 0x179   : > { %v504_v44 = vadd.f32 %v503_v45, %v487_v63  ;;  %v518_v7 = vpop.permute.xlu0 %517  ;;  %v510_v51 = vadd.f32 %v1692_v54, %v497_v2  ;;  %v592_v2 = vmul.f32 %v1766_v25, %v587_v43 }
 0x17a   : > { %v519_v24 = vsel %vm445_vm8, %v518_v7, 0.0  ;;  %v654_v48 = vpop.permute.xlu1 %653 }
 0x17b   : > { %v516_v29 = vadd.f32 %v1695_v56, %v504_v44  ;;  %v524_v30 = vmul.f32 %v1699_v58, %v519_v24  ;;  %v530_v31 = vmul.f32 %v528_v9, %v519_v24  ;;  %v548_v56 = vmul.f32 %v1722_v3, %v543_v57 }
 0x17c   : > { %v563_v58 = vmul.f32 %v1745_v15, %v552_v46  ;;  %v602_v3 = vsel %vm460_vm9, %v1759_v21, 0.0  ;;  %v655_v46 = vsel %vm445_vm8, %v654_v48, 0.0 }
 0x17d   : > { %v525_v52 = vadd.f32 %v524_v30, %v510_v51  ;;  %v533_v34 = vpop.permute.xlu0 %532  ;;  %v531_v37 = vadd.f32 %v530_v31, %v516_v29  ;;  %v607_v49 = vmul.f32 %v1743_v14, %v602_v3  ;;  %v645_v29 = vmul.f32 %v643_v4, %v1702_v61 }
 0x17e   : > { %v534_v13 = vsel %vm460_vm9, %v533_v34, 0.0  ;;  %v669_v53 = vpop.permute.xlu1 %668  ;;  %v666_v30 = vmul.f32 %v1757_v20, %v655_v46 }
 0x17f   : > { %v558_v40 = vadd.f32 %v557_v32, %v525_v52  ;;  %v539_v54 = vmul.f32 %v1718_v1, %v534_v13  ;;  %v670_v32 = vsel %vm460_vm9, %v669_v53, 0.0 }
 0x180   : > { %v675_v20 = vmul.f32 %v1761_v22, %v670_v32 }
 0x181   : > { %v540_v42 = vadd.f32 %v539_v54, %v531_v37  ;;  %v618_v1 = vpop.permute.xlu0 %617  ;;  %v578_v62 = vadd.f32 %v577_v12, %v558_v40 }
 0x182   : > { %v619_v50 = vsel %vm406_vm6, %v618_v1, 0.0  ;;  %v686_v63 = vpop.permute.xlu1 %685 }
 0x183   : > { %v549_v9 = vadd.f32 %v548_v56, %v540_v42  ;;  %v624_v17 = vmul.f32 %v1753_v5, %v619_v50  ;;  %v593_v7 = vadd.f32 %v592_v2, %v578_v62  ;;  %v651_v5 = vmul.f32 %v1755_v19, %v1702_v61 }
 0x184   : > { %v571_v19 = vmul.f32 %v1734_v8, %v1588_v6  ;;  %v687_v6 = vsel %vm406_vm6, %v686_v63, 0.0 }
 0x185   : > { %v564_v47 = vadd.f32 %v563_v58, %v549_v9  ;;  %v627_v55 = vpop.permute.xlu0 %626  ;;  %v692_v28 = vmul.f32 %v1763_v23, %v687_v6 }
 0x186   : > { %v628_v59 = vsel %vm423_vm7, %v627_v55, 0.0 }
 0x187   : > { %v584_v41 = vadd.f32 %v583_v11, %v564_v47  ;;  %v639_v21 = vmul.f32 %v1751_v18, %v628_v59  ;;  %v633_v45 = vmul.f32 %v631_v35, %v628_v59 }
 0x189   : > { %v599_v15 = vadd.f32 %v598_v38, %v584_v41  ;;  %v634_v24 = vadd.f32 %v633_v45, %v593_v7 }
 0x18b   : > { %v608_v16 = vadd.f32 %v607_v49, %v599_v15  ;;  %v646_v52 = vadd.f32 %v645_v29, %v634_v24 }
 0x18d   : > { %v625_v60 = vadd.f32 %v624_v17, %v608_v16 }
 0x18f   : > { %v1837_v14 = vpop.permute.xlu0 %713  ;;  %v640_v44 = vadd.f32 %v639_v21, %v625_v60 }
 0x191   : > { %v652_v18 = vadd.f32 %v651_v5, %v640_v44 }
 0x193   : > { %v658_v10 = vpop.permute.xlu1 %657  ;;  %v667_v34 = vadd.f32 %v666_v30, %v652_v18 }
 0x194   : > { %v1844_v51 = vpop.permute.xlu0 %722  ;;  %v660_v25 = vmul.f32 %v658_v10, %v655_v46 }
 0x195   : > { %v676_v22 = vadd.f32 %v675_v20, %v667_v34 }
 0x196   : > { %v661_v35 = vadd.f32 %v660_v25, %v646_v52 }
 0x197   : > { %v695_v31 = vpop.permute.xlu1 %694 }
 0x198   : > { %v696_v8 = vsel %vm423_vm7, %v695_v31, 0.0 }
 0x199   : > { %v729_v57 = vpop.permute.xlu0 %728  ;;  %v701_v54 = vmul.f32 %v1768_v26, %v696_v8 }
 0x19a   : > { %v731_v61 = vadd.f32 %v729_v57, %v571_v19 }
 0x19b   : > { %v738_v13 = vpop.permute.xlu1 %737 }
 0x19c   : > { %v732_v37 = vmax.f32 %v731_v61, 0.0  ;;  %v740_v40 = vadd.f32 %v738_v13, %v661_v35 }
 0x19e   : > { %733 = vst [vmem:[%s333_s14] sm:$0xff] %v732_v37  ;;  %v741_v27 = vmax.f32 %v740_v40, 0.0  ;;  %s1369_s14 = smov [#allocation7]  }
 0x19f   : > { %v710_v56 = vpop.permute.xlu1 %709  ;;  %s1204_s26 = sshll.u32 %s1369_s14, 4  ;;  %s1205_s26 = int_to_ptr.vmem [resolvable:$false] %s1204_s26 }
 0x1a0   : > { %s1206_s13 = scalar_lea.vmem %s1205_s26, 256  ;;  %p1207_p9 = scmp.lt.s32.totalorder %s1871_s11, %s1205_s26 }
 0x1a1   : > { %p1208_p0 = scmp.lt.s32.totalorder %s1206_s13, %s1200_s12 }
 0x1a3   : > { %p1209_p1 = por %p1208_p0, %p1207_p9 }
 0x1a5   : > { %p1210_p11 = pnand %p1209_p1, %p1203_p8 }
 0x1a7   : > { %1213 = shalt.err (!%p1210_p11)
}
 0x1a8   : > { %s1214_s18 = scalar_lea.hbm %s1869_s19, 128  ;;  %s1218_s14 = scalar_lea.hbm %s1990_s4, 256 }
 0x1a9   : > { %p1215_p12 = scmp.ne.s32.totalorder %s1869_s19, %s1214_s18  ;;  %p1219_p10 = scmp.lt.u32.totalorder %s1869_s19, %s1990_s4 }
 0x1aa   : > { %p1220_p6 = scmp.lt.u32.totalorder %s1218_s14, %s1214_s18  ;;  %p1222_p3 = scmp.lt.u32.totalorder %s1214_s18, %s1869_s19 }
 0x1ab   : > { %p1216_p2 = pnand %p1215_p12, %p2007_p7 }
 0x1ac   : > { %p1221_p13 = por %p1220_p6, %p1219_p10 }
 0x1ad   : > { %p1217_p4 = pneg %p1216_p2 }
 0x1ae   : > { %p1223_p5 = por %p1222_p3, %p1221_p13 }
 0x1b0   : > { %p1224_p8 = pnand %p1223_p5, %p1217_p4 }
 0x1b2   : > { %1227 = shalt.err (!%p1224_p8)
}
 0x1b3   : > { %1009 = dma.vmem_to_hbm [thread:$0]  (%p2007_p7), %s1871_s11, 128, %s1869_s19, %s753_s17   ;;  %v693_v23 = vadd.f32 %v692_v28, %v676_v22 }
 0x1b4   : > { %s2008_s13 = scalar_lea.vmem [#allocation8], %s1560_s15  ;;  %s2009_s29 = sand.u32 1, %s1428_s25  }
 0x1b5   : > { %742 = vst [vmem:[%s2008_s13] sm:$0xff] %v741_v27  ;;  %s1909_s12 = scalar_lea.sflag [#allocation9], %s2009_s29  ;;  %s1228_s18 = scalar_lea.vmem %s1879_s20, 128 }
 0x1b6   : > { %p1229_p9 = scmp.ne.s32.totalorder %s1879_s20, %s1228_s18  ;;  %s1370_s28 = smov [#allocation8]  }
 0x1b7   : > { %s1232_s8 = sshll.u32 %s1370_s28, 4  ;;  %s1233_s8 = int_to_ptr.vmem [resolvable:$false] %s1232_s8 }
 0x1b8   : > { %p1230_p0 = pnand %p1229_p9, %p2007_p7  ;;  %s1234_s14 = scalar_lea.vmem %s1233_s8, 256 }
 0x1b9   : > { %p1235_p11 = scmp.lt.s32.totalorder %s1879_s20, %s1233_s8  ;;  %p1236_p12 = scmp.lt.s32.totalorder %s1234_s14, %s1228_s18 }
 0x1ba   : > { %p1231_p1 = pneg %p1230_p0 }
 0x1bb   : > { %p1237_p2 = por %p1236_p12, %p1235_p11 }
 0x1bd   : > { %p1238_p4 = pnand %p1237_p2, %p1231_p1 }
 0x1bf   : > { %1241 = shalt.err (!%p1238_p4)
}
 0x1c0   : > { %s1242_s25 = scalar_lea.hbm %s1877_s16, 128  ;;  %s1246_s17 = scalar_lea.hbm %s1991_s5, 256 }
 0x1c1   : > { %p1243_p10 = scmp.ne.s32.totalorder %s1877_s16, %s1242_s25  ;;  %p1247_p3 = scmp.lt.u32.totalorder %s1877_s16, %s1991_s5 }
 0x1c2   : > { %p1248_p5 = scmp.lt.u32.totalorder %s1246_s17, %s1242_s25  ;;  %p1250_p9 = scmp.lt.u32.totalorder %s1242_s25, %s1877_s16 }
 0x1c3   : > { %p1244_p6 = pnand %p1243_p10, %p2007_p7 }
 0x1c4   : > { %p1249_p8 = por %p1248_p5, %p1247_p3 }
 0x1c5   : > { %p1245_p13 = pneg %p1244_p6 }
 0x1c6   : > { %p1251_p0 = por %p1250_p9, %p1249_p8 }
 0x1c8   : > { %p1252_p1 = pnand %p1251_p0, %p1245_p13 }
 0x1ca   : > { %1255 = shalt.err (!%p1252_p1)
}
 0x1cb   : > { %1010 = dma.vmem_to_hbm [thread:$0]  (%p2007_p7), %s1879_s20, 128, %s1877_s16, %s1909_s12   ;;  %v711_v26 = vsel %vm445_vm8, %v710_v56, 0.0  ;;  %v702_v42 = vadd.f32 %v701_v54, %v693_v23  ;;  %v747_v58 = vpop.permute.xlu1 %746  ;;  %v707_v9 = vmul.f32 %v1786_v39, %v1713_v0 }
 0x1cc   : > { %v716_v4 = vmul.f32 %v1837_v14, %v711_v26  ;;  %s347_s20 = scalar_lea.vmem [#allocation10], %s1560_s15  ;;  %s1946_s28 = scalar_lea.hbm %s1992_s6, %s1853_s7 }
 0x1cd   : > { %v708_v43 = vadd.f32 %v707_v9, %v702_v42  ;;  %s802_s16 = sshll.u32 %s347_s20, 4  ;;  %s1371_s14 = smov [#allocation10]   ;;  %s803_s16 = int_to_ptr.vmem [resolvable:$true] %s802_s16 }
 0x1ce   : > { %s1256_s8 = scalar_lea.vmem %s803_s16, 128  ;;  %s1260_s25 = sshll.u32 %s1371_s14, 4  ;;  %s1261_s25 = int_to_ptr.vmem [resolvable:$false] %s1260_s25 }
 0x1cf   : > { %v719_v11 = vpop.permute.xlu1 %718  ;;  %v717_v41 = vadd.f32 %v716_v4, %v708_v43  ;;  %p1257_p11 = scmp.ne.s32.totalorder %s803_s16, %s1256_s8  ;;  %s1262_s11 = scalar_lea.vmem %s1261_s25, 256 }
 0x1d0   : > { %v720_v47 = vsel %vm460_vm9, %v719_v11, 0.0  ;;  %p1263_p4 = scmp.lt.s32.totalorder %s803_s16, %s1261_s25  ;;  %p1264_p10 = scmp.lt.s32.totalorder %s1262_s11, %s1256_s8 }
 0x1d1   : > { %v725_v38 = vmul.f32 %v1844_v51, %v720_v47  ;;  %p1258_p12 = pnand %p1257_p11, %p2007_p7 }
 0x1d2   : > { %p1265_p6 = por %p1264_p10, %p1263_p4 }
 0x1d3   : > { %v726_v48 = vadd.f32 %v725_v38, %v717_v41  ;;  %p1259_p2 = pneg %p1258_p12 }
 0x1d5   : > { %v749_v33 = vadd.f32 %v747_v58, %v726_v48  ;;  %p1266_p13 = pnand %p1265_p6, %p1259_p2 }
 0x1d7   : > { %v750_v1 = vmax.f32 %v749_v33, 0.0 }
 0x1d9   : > { %751 = vst [vmem:[%s347_s20] sm:$0xff] %v750_v1 }
 0x1da   : > { %1269 = shalt.err (!%p1266_p13)
}
 0x1db   : > { %s1270_s15 = scalar_lea.hbm %s1946_s28, 128  ;;  %s1274_s17 = scalar_lea.hbm %s1992_s6, 256 }
 0x1dc   : > { %p1271_p3 = scmp.ne.s32.totalorder %s1946_s28, %s1270_s15  ;;  %p1275_p9 = scmp.lt.u32.totalorder %s1946_s28, %s1992_s6 }
 0x1dd   : > { %p1276_p0 = scmp.lt.u32.totalorder %s1274_s17, %s1270_s15  ;;  %p1278_p11 = scmp.lt.u32.totalorder %s1270_s15, %s1946_s28 }
 0x1de   : > { %p1272_p5 = pnand %p1271_p3, %p2007_p7 }
 0x1df   : > { %p1277_p1 = por %p1276_p0, %p1275_p9 }
 0x1e0   : > { %p1273_p8 = pneg %p1272_p5 }
 0x1e1   : > { %p1279_p12 = por %p1278_p11, %p1277_p1 }
 0x1e3   : > { %p1280_p2 = pnand %p1279_p12, %p1273_p8 }
 0x1e5   : > { %1283 = shalt.err (!%p1280_p2)
}
 0x1e6   : > { %1011 = dma.vmem_to_hbm [thread:$0]  (%p2007_p7), %s803_s16, 128, %s1946_s28, %s1909_s12  }
 0x1e7 PF: > { %s814_s20 = sand.u32 1, %s1318_s21   ;;  %p2010_p4 = scmp.ne.s32.totalorder %s2000_s10, 0 }
 0x1e8   : > { %p2011_p10 = scmp.ge.s32.totalorder %s1330_s24, 2  ;;  %s815_s29 = scalar_lea.sflag [#allocation4], %s814_s20 }
 0x1ea   : > { %p1023_p6 = pnand %p2011_p10, %p2010_p4 }
 0x1ec   : > { %1309 = dma.done.wait (!%p1023_p6), %s815_s29, 128  }
 0x1ed   : > { %1311 = vsyncadd (!%p1023_p6), %s815_s29, 4294967168  ;;  %s2012_s18 = sadd.s32 4294967294, %s1330_s24  }
 0x1ee   : > { %s823_s8 = sand.u32 1, %s2012_s18  }
 0x1ef   : > { %s824_s14 = scalar_lea.sflag [#allocation9], %s823_s8 }
 0x1f0   : > { %1313 = dma.done.wait (!%p1023_p6), %s824_s14, 256  }
 0x1f1   : > { %1315 = vsyncadd (!%p1023_p6), %s824_s14, 4294967040  ;;  %p26_p7 = scmp.ge.s32.totalorder %s1432_s27, 4   ;;  %s2013_s21 = smov %s1322_s22 }
 0x1f2   : > { %s2014_s22 = smov %s1326_s23  ;;  %s2015_s23 = smov %s1444_s30 }
 0x1f3   : > { %s2016_s24 = smov %s1432_s27  ;;  %28 = sbr.rel (!%p26_p7) target bundleno = 9 (0x9), region = 132 }
 0x1fa   :  { %838 = vsyncpa [#allocation3], 1 }
 0x1fb   :  { %840 = vsyncpa [#allocation3 + $0x1], 1 }
 0x1fc   :  { %841 = vsyncpa [#allocation6], 1 }
 0x1fd   :  { %843 = vsyncpa [#allocation6 + $0x1], 1 }
 0x1fe   :  { %844 = vsyncpa [#allocation4], 1 }
 0x1ff   :  { %846 = vsyncpa [#allocation4 + $0x1], 1 }
 0x200   :  { %847 = vsyncpa [#allocation9], 1 }
 0x201   :  { %849 = vsyncpa [#allocation9 + $0x1], 1 }

</bundles_post_ra>
